<compile_context>
chip_gen: v7x
topology: tpu7x:2x2x1
jax: 0.10.0
libtpu: 0.0.40
codegen_flags: <defaults>
</compile_context>

<pallas_src>
import functools

import jax
import jax.numpy as jnp
from jax.experimental import pallas as pl
from jax.experimental.pallas import tpu as pltpu

SP = 8  # sublane-aligned padding of the sub-batch / per-step row group (5 -> 8)


def proofreader_kernel(px_ref, whh_s_ref, wih_m_ref, whh_m_ref, b_m_ref,
                       wfc_ref, bfc_ref, out_ref, pre_m_ref, *, B, T, S):
    H = whh_s_ref.shape[0]

    # Weights arrive pre-cast to bf16 (wrapper); biases stay f32.
    whh_s = whh_s_ref[...]            # (H, H) bf16   sub-RNN W_hh
    wih_m = wih_m_ref[...]            # (H, H) bf16   main-RNN W_ih
    whh_m = whh_m_ref[...]            # (H, H) bf16   main-RNN W_hh
    wfc = wfc_ref[...]                # (H, O) bf16
    b_m = b_m_ref[...]                # (1, H) f32  (= b_ih + b_hh of main RNN)
    bfc = bfc_ref[...]                # (1, O) f32

    # ---- sub RNN ------------------------------------------------------------
    # px_ref rows are pre-projected, bias-folded inputs (x @ W_ih + b), laid
    # out (b, t)-major with 8 aligned rows per step (rows 0..S-1 live). The
    # sub hidden is carried across the outer batch loop (NOT reset), exactly
    # like the PyTorch forward. Per step only one dependent matmul remains on
    # the chain; slice starts are static multiples of 8 -> plain aligned vld.
    sub_h = jnp.zeros((SP, H), jnp.float32)
    snapshots = []
    for b in range(B):
        for t in range(T):
            base = (b * T + t) * SP
            xt = px_ref[pl.ds(base, SP), :]
            sub_h = jnp.tanh(
                xt + jnp.dot(sub_h.astype(jnp.bfloat16), whh_s,
                             preferred_element_type=jnp.float32))
        snapshots.append(sub_h)        # == _out[:, -1, :] for outer element b

    # ---- main-RNN input projection: one batched MXU matmul, bias folded ----
    all_sub = jnp.concatenate(snapshots, axis=0)                   # (B*SP, H)
    pre_m = (jnp.dot(all_sub.astype(jnp.bfloat16), wih_m,
                     preferred_element_type=jnp.float32) + b_m)    # (B*SP, H)

    # Reorder ONCE (off the recurrence chain) to t-major 8-row groups and park
    # the slab in VMEM scratch so every main-RNN step is an aligned 8-row vld.
    pad = jnp.zeros((SP - B, H), jnp.float32) if SP > B else None
    groups = []
    for t in range(S):
        rows = [pre_m[b * SP + t:b * SP + t + 1, :] for b in range(B)]
        if pad is not None:
            rows.append(pad)
        groups.append(jnp.concatenate(rows, axis=0))               # (SP, H)
    pre_m_ref[...] = jnp.concatenate(groups, axis=0)               # (S*SP, H)

    # ---- main RNN over the length-S sequence (zero initial hidden) ---------
    h = jnp.zeros((SP, H), jnp.float32)          # rows 0..B-1 live, rest pad
    for t in range(S):
        xt = pre_m_ref[pl.ds(t * SP, SP), :]
        h = jnp.tanh(xt + jnp.dot(h.astype(jnp.bfloat16), whh_m,
                                  preferred_element_type=jnp.float32))

    # ---- final linear layer -------------------------------------------------
    out = (jnp.dot(h[:B, :].astype(jnp.bfloat16), wfc,
                   preferred_element_type=jnp.float32) + bfc)
    out_ref[...] = out.astype(out_ref.dtype)


def proofreader_forward(x_tokens, params):
    """x_tokens: (B, 5, T) int32 character indices (same input as the module)."""
    B, S, T = x_tokens.shape
    assert S == 5 and B <= SP
    H = params["w_hh_sub"].shape[0]
    O = params["w_fc"].shape[1]

    # Fuse the CharToVec embedding with the sub-RNN input projection + bias:
    # a one-time (vocab,5)@(5,H) weight prep; the per-input work is only the
    # gather the encoder was doing anyway. Kernel sees lane-dense (., H) rows.
    fused_table = params["embed"] @ params["w_ih_sub"] + params["b_sub"]  # (V, H)

    # Row layout: (b*T + t)*8 + s  <-  token x_tokens[b, s, t]; s padded 5 -> 8
    # (pad token 0; padding rows never influence live rows of the recurrence).
    tok_bts = jnp.transpose(x_tokens, (0, 2, 1))                 # (B, T, S)
    tok_pad = jnp.pad(tok_bts, ((0, 0), (0, 0), (0, SP - S)))    # (B, T, 8)
    px = fused_table[tok_pad.reshape(B * T * SP)]                # (B*T*8, H) f32

    # Pre-cast MXU weight operands to bf16 once (halves weight DMA bytes,
    # removes in-kernel cast traffic); biases stay f32.
    whh_s = params["w_hh_sub"].astype(jnp.bfloat16)
    wih_m = params["w_ih_main"].astype(jnp.bfloat16)
    whh_m = params["w_hh_main"].astype(jnp.bfloat16)
    wfc = params["w_fc"].astype(jnp.bfloat16)

    kernel = functools.partial(proofreader_kernel, B=B, T=T, S=S)
    vmem = pl.BlockSpec(memory_space=pltpu.MemorySpace.VMEM)
    return pl.pallas_call(
        kernel,
        out_shape=jax.ShapeDtypeStruct((B, O), jnp.float32),
        in_specs=[vmem] * 7,
        out_specs=vmem,
        scratch_shapes=[pltpu.VMEM((S * SP, H), jnp.float32)],
    )(px, whh_s, wih_m, whh_m, params["b_main"], wfc, params["b_fc"])


def proofreader_reference(x_tokens, params):
    """Pure-JAX f32 reference with identical semantics (tolerance check)."""
    B, S, T = x_tokens.shape
    H = params["w_hh_sub"].shape[0]
    x_enc = params["embed"][x_tokens].astype(jnp.float32)        # (B, S, T, V)
    sub_h = jnp.zeros((S, H), jnp.float32)
    sub_outs = []
    for b in range(B):
        for t in range(T):
            sub_h = jnp.tanh(x_enc[b, :, t, :] @ params["w_ih_sub"]
                             + sub_h @ params["w_hh_sub"] + params["b_sub"])
        sub_outs.append(sub_h)
    h = jnp.zeros((B, H), jnp.float32)
    for t in range(S):
        xt = jnp.stack([sub_outs[b][t] for b in range(B)], axis=0)
        h = jnp.tanh(xt @ params["w_ih_main"]
                     + h @ params["w_hh_main"] + params["b_main"])
    return h @ params["w_fc"] + params["b_fc"]


# TODO(synk): CharToVec is not provided in the reference source; synthesized as
# a deterministic embedding lookup producing 5-dim character vectors.
def init_params(key, hidden_dim=128, output_size=16, vector_size=5, vocab_size=64):
    ks = jax.random.split(key, 12)
    bound = 1.0 / float(hidden_dim) ** 0.5

    def u(k, shape, b):
        return jax.random.uniform(k, shape, jnp.float32, -b, b)

    return {
        # CharToVec embedding table (synthetic)
        "embed": u(ks[0], (vocab_size, vector_size), 1.0),
        # sub_rnn = nn.RNN(5, H): weights stored transposed (in, out)
        "w_ih_sub": u(ks[1], (vector_size, hidden_dim), bound),
        "w_hh_sub": u(ks[2], (hidden_dim, hidden_dim), bound),
        "b_sub": u(ks[3], (1, hidden_dim), bound) + u(ks[4], (1, hidden_dim), bound),
        # rnn = nn.RNN(128, H); module requires hidden_dim == 128
        "w_ih_main": u(ks[5], (hidden_dim, hidden_dim), bound),
        "w_hh_main": u(ks[6], (hidden_dim, hidden_dim), bound),
        "b_main": u(ks[7], (1, hidden_dim), bound) + u(ks[8], (1, hidden_dim), bound),
        # fc = nn.Linear(H, output_size): stored transposed (H, O)
        "w_fc": u(ks[9], (hidden_dim, output_size), bound),
        "b_fc": u(ks[10], (1, output_size), bound),
    }


if __name__ == "__main__":
    key = jax.random.PRNGKey(0)
    k_par, k_tok = jax.random.split(key)

    B, S, T = 2, 5, 8          # outer batch, fixed sub-batch/outer-seq of 5, sub-seq len
    HIDDEN = 128               # hidden_dim (must be 128 for this module)
    OUTPUT = 16                # output_size
    VOCAB = 64

    params = init_params(k_par, hidden_dim=HIDDEN, output_size=OUTPUT,
                         vocab_size=VOCAB)

    # Raw input: character indices, shape (B, 5, T)
    x_tokens = jax.random.randint(k_tok, (B, S, T), 0, VOCAB, dtype=jnp.int32)

    out = proofreader_forward(x_tokens, params)          # (B, OUTPUT)
    jax.block_until_ready(out)
    assert out.shape == (B, OUTPUT)
    assert bool(jnp.all(jnp.isfinite(out)))

    # correctness vs. f32 reference (bf16 MXU operands -> loose tolerance)
    ref = proofreader_reference(x_tokens, params)
    max_diff = float(jnp.max(jnp.abs(out - ref)))
    assert max_diff < 1e-1, f"max diff vs reference too large: {max_diff}"

    print("KERNEL_OK")
</pallas_src>

<mosaic_0001>
module attributes {stable_mosaic.version = 11 : i64} {
  func.func @proofreader_kernel(%arg0: memref<128x128xf32, #tpu.memory_space<vmem>>, %arg1: memref<128x128xbf16, #tpu.memory_space<vmem>>, %arg2: memref<128x128xbf16, #tpu.memory_space<vmem>>, %arg3: memref<128x128xbf16, #tpu.memory_space<vmem>>, %arg4: memref<1x128xf32, #tpu.memory_space<vmem>>, %arg5: memref<128x16xbf16, #tpu.memory_space<vmem>>, %arg6: memref<1x16xf32, #tpu.memory_space<vmem>>, %arg7: memref<2x16xf32, #tpu.memory_space<vmem>>, %arg8: memref<40x128xf32, #tpu.memory_space<vmem>>) attributes {dimension_semantics = [], scalar_prefetch = 0 : i64, scratch_operands = 1 : i64, tpu.core_type = #tpu.core_type<tc>} {
    %c0 = arith.constant 0 : index
    %c0_0 = arith.constant 0 : index
    %0 = vector.load %arg1[%c0, %c0_0] : memref<128x128xbf16, #tpu.memory_space<vmem>>, vector<128x128xbf16>
    %c0_1 = arith.constant 0 : index
    %c0_2 = arith.constant 0 : index
    %1 = vector.load %arg2[%c0_1, %c0_2] : memref<128x128xbf16, #tpu.memory_space<vmem>>, vector<128x128xbf16>
    %c0_3 = arith.constant 0 : index
    %c0_4 = arith.constant 0 : index
    %2 = vector.load %arg3[%c0_3, %c0_4] : memref<128x128xbf16, #tpu.memory_space<vmem>>, vector<128x128xbf16>
    %c0_5 = arith.constant 0 : index
    %c0_6 = arith.constant 0 : index
    %3 = vector.load %arg5[%c0_5, %c0_6] : memref<128x16xbf16, #tpu.memory_space<vmem>>, vector<128x16xbf16>
    %c0_7 = arith.constant 0 : index
    %c0_8 = arith.constant 0 : index
    %4 = vector.load %arg4[%c0_7, %c0_8] : memref<1x128xf32, #tpu.memory_space<vmem>>, vector<1x128xf32>
    %c0_9 = arith.constant 0 : index
    %c0_10 = arith.constant 0 : index
    %5 = vector.load %arg6[%c0_9, %c0_10] : memref<1x16xf32, #tpu.memory_space<vmem>>, vector<1x16xf32>
    %cst = arith.constant 0.000000e+00 : f32
    %6 = vector.broadcast %cst : f32 to vector<8x128xf32>
    %c0_11 = arith.constant 0 : index
    %c0_12 = arith.constant 0 : index
    %7 = vector.load %arg0[%c0_11, %c0_12] : memref<128x128xf32, #tpu.memory_space<vmem>>, vector<8x128xf32>
    %8 = arith.truncf %6 : vector<8x128xf32> to vector<8x128xbf16>
    %cst_13 = arith.constant dense<0.000000e+00> : vector<8x128xf32>
    %9 = tpu.matmul %8, %0, %cst_13 {dimension_numbers = #tpu.dot_dimension_numbers<[1], [0], [0], [1], [0, 0, 1, 1], [], []>} : vector<8x128xbf16>, vector<128x128xbf16>, vector<8x128xf32> -> vector<8x128xf32>
    %10 = arith.addf %7, %9 : vector<8x128xf32>
    %11 = math.tanh %10 : vector<8x128xf32>
    %c8 = arith.constant 8 : index
    %c0_14 = arith.constant 0 : index
    %12 = vector.load %arg0[%c8, %c0_14] : memref<128x128xf32, #tpu.memory_space<vmem>>, vector<8x128xf32>
    %13 = arith.truncf %11 : vector<8x128xf32> to vector<8x128xbf16>
    %cst_15 = arith.constant dense<0.000000e+00> : vector<8x128xf32>
    %14 = tpu.matmul %13, %0, %cst_15 {dimension_numbers = #tpu.dot_dimension_numbers<[1], [0], [0], [1], [0, 0, 1, 1], [], []>} : vector<8x128xbf16>, vector<128x128xbf16>, vector<8x128xf32> -> vector<8x128xf32>
    %15 = arith.addf %12, %14 : vector<8x128xf32>
    %16 = math.tanh %15 : vector<8x128xf32>
    %c16 = arith.constant 16 : index
    %c0_16 = arith.constant 0 : index
    %17 = vector.load %arg0[%c16, %c0_16] : memref<128x128xf32, #tpu.memory_space<vmem>>, vector<8x128xf32>
    %18 = arith.truncf %16 : vector<8x128xf32> to vector<8x128xbf16>
    %cst_17 = arith.constant dense<0.000000e+00> : vector<8x128xf32>
    %19 = tpu.matmul %18, %0, %cst_17 {dimension_numbers = #tpu.dot_dimension_numbers<[1], [0], [0], [1], [0, 0, 1, 1], [], []>} : vector<8x128xbf16>, vector<128x128xbf16>, vector<8x128xf32> -> vector<8x128xf32>
    %20 = arith.addf %17, %19 : vector<8x128xf32>
    %21 = math.tanh %20 : vector<8x128xf32>
    %c24 = arith.constant 24 : index
    %c0_18 = arith.constant 0 : index
    %22 = vector.load %arg0[%c24, %c0_18] : memref<128x128xf32, #tpu.memory_space<vmem>>, vector<8x128xf32>
    %23 = arith.truncf %21 : vector<8x128xf32> to vector<8x128xbf16>
    %cst_19 = arith.constant dense<0.000000e+00> : vector<8x128xf32>
    %24 = tpu.matmul %23, %0, %cst_19 {dimension_numbers = #tpu.dot_dimension_numbers<[1], [0], [0], [1], [0, 0, 1, 1], [], []>} : vector<8x128xbf16>, vector<128x128xbf16>, vector<8x128xf32> -> vector<8x128xf32>
    %25 = arith.addf %22, %24 : vector<8x128xf32>
    %26 = math.tanh %25 : vector<8x128xf32>
    %c32 = arith.constant 32 : index
    %c0_20 = arith.constant 0 : index
    %27 = vector.load %arg0[%c32, %c0_20] : memref<128x128xf32, #tpu.memory_space<vmem>>, vector<8x128xf32>
    %28 = arith.truncf %26 : vector<8x128xf32> to vector<8x128xbf16>
    %cst_21 = arith.constant dense<0.000000e+00> : vector<8x128xf32>
    %29 = tpu.matmul %28, %0, %cst_21 {dimension_numbers = #tpu.dot_dimension_numbers<[1], [0], [0], [1], [0, 0, 1, 1], [], []>} : vector<8x128xbf16>, vector<128x128xbf16>, vector<8x128xf32> -> vector<8x128xf32>
    %30 = arith.addf %27, %29 : vector<8x128xf32>
    %31 = math.tanh %30 : vector<8x128xf32>
    %c40 = arith.constant 40 : index
    %c0_22 = arith.constant 0 : index
    %32 = vector.load %arg0[%c40, %c0_22] : memref<128x128xf32, #tpu.memory_space<vmem>>, vector<8x128xf32>
    %33 = arith.truncf %31 : vector<8x128xf32> to vector<8x128xbf16>
    %cst_23 = arith.constant dense<0.000000e+00> : vector<8x128xf32>
    %34 = tpu.matmul %33, %0, %cst_23 {dimension_numbers = #tpu.dot_dimension_numbers<[1], [0], [0], [1], [0, 0, 1, 1], [], []>} : vector<8x128xbf16>, vector<128x128xbf16>, vector<8x128xf32> -> vector<8x128xf32>
    %35 = arith.addf %32, %34 : vector<8x128xf32>
    %36 = math.tanh %35 : vector<8x128xf32>
    %c48 = arith.constant 48 : index
    %c0_24 = arith.constant 0 : index
    %37 = vector.load %arg0[%c48, %c0_24] : memref<128x128xf32, #tpu.memory_space<vmem>>, vector<8x128xf32>
    %38 = arith.truncf %36 : vector<8x128xf32> to vector<8x128xbf16>
    %cst_25 = arith.constant dense<0.000000e+00> : vector<8x128xf32>
    %39 = tpu.matmul %38, %0, %cst_25 {dimension_numbers = #tpu.dot_dimension_numbers<[1], [0], [0], [1], [0, 0, 1, 1], [], []>} : vector<8x128xbf16>, vector<128x128xbf16>, vector<8x128xf32> -> vector<8x128xf32>
    %40 = arith.addf %37, %39 : vector<8x128xf32>
    %41 = math.tanh %40 : vector<8x128xf32>
    %c56 = arith.constant 56 : index
    %c0_26 = arith.constant 0 : index
    %42 = vector.load %arg0[%c56, %c0_26] : memref<128x128xf32, #tpu.memory_space<vmem>>, vector<8x128xf32>
    %43 = arith.truncf %41 : vector<8x128xf32> to vector<8x128xbf16>
    %cst_27 = arith.constant dense<0.000000e+00> : vector<8x128xf32>
    %44 = tpu.matmul %43, %0, %cst_27 {dimension_numbers = #tpu.dot_dimension_numbers<[1], [0], [0], [1], [0, 0, 1, 1], [], []>} : vector<8x128xbf16>, vector<128x128xbf16>, vector<8x128xf32> -> vector<8x128xf32>
    %45 = arith.addf %42, %44 : vector<8x128xf32>
    %46 = math.tanh %45 : vector<8x128xf32>
    %c64 = arith.constant 64 : index
    %c0_28 = arith.constant 0 : index
    %47 = vector.load %arg0[%c64, %c0_28] : memref<128x128xf32, #tpu.memory_space<vmem>>, vector<8x128xf32>
    %48 = arith.truncf %46 : vector<8x128xf32> to vector<8x128xbf16>
    %cst_29 = arith.constant dense<0.000000e+00> : vector<8x128xf32>
    %49 = tpu.matmul %48, %0, %cst_29 {dimension_numbers = #tpu.dot_dimension_numbers<[1], [0], [0], [1], [0, 0, 1, 1], [], []>} : vector<8x128xbf16>, vector<128x128xbf16>, vector<8x128xf32> -> vector<8x128xf32>
    %50 = arith.addf %47, %49 : vector<8x128xf32>
    %51 = math.tanh %50 : vector<8x128xf32>
    %c72 = arith.constant 72 : index
    %c0_30 = arith.constant 0 : index
    %52 = vector.load %arg0[%c72, %c0_30] : memref<128x128xf32, #tpu.memory_space<vmem>>, vector<8x128xf32>
    %53 = arith.truncf %51 : vector<8x128xf32> to vector<8x128xbf16>
    %cst_31 = arith.constant dense<0.000000e+00> : vector<8x128xf32>
    %54 = tpu.matmul %53, %0, %cst_31 {dimension_numbers = #tpu.dot_dimension_numbers<[1], [0], [0], [1], [0, 0, 1, 1], [], []>} : vector<8x128xbf16>, vector<128x128xbf16>, vector<8x128xf32> -> vector<8x128xf32>
    %55 = arith.addf %52, %54 : vector<8x128xf32>
    %56 = math.tanh %55 : vector<8x128xf32>
    %c80 = arith.constant 80 : index
    %c0_32 = arith.constant 0 : index
    %57 = vector.load %arg0[%c80, %c0_32] : memref<128x128xf32, #tpu.memory_space<vmem>>, vector<8x128xf32>
    %58 = arith.truncf %56 : vector<8x128xf32> to vector<8x128xbf16>
    %cst_33 = arith.constant dense<0.000000e+00> : vector<8x128xf32>
    %59 = tpu.matmul %58, %0, %cst_33 {dimension_numbers = #tpu.dot_dimension_numbers<[1], [0], [0], [1], [0, 0, 1, 1], [], []>} : vector<8x128xbf16>, vector<128x128xbf16>, vector<8x128xf32> -> vector<8x128xf32>
    %60 = arith.addf %57, %59 : vector<8x128xf32>
    %61 = math.tanh %60 : vector<8x128xf32>
    %c88 = arith.constant 88 : index
    %c0_34 = arith.constant 0 : index
    %62 = vector.load %arg0[%c88, %c0_34] : memref<128x128xf32, #tpu.memory_space<vmem>>, vector<8x128xf32>
    %63 = arith.truncf %61 : vector<8x128xf32> to vector<8x128xbf16>
    %cst_35 = arith.constant dense<0.000000e+00> : vector<8x128xf32>
    %64 = tpu.matmul %63, %0, %cst_35 {dimension_numbers = #tpu.dot_dimension_numbers<[1], [0], [0], [1], [0, 0, 1, 1], [], []>} : vector<8x128xbf16>, vector<128x128xbf16>, vector<8x128xf32> -> vector<8x128xf32>
    %65 = arith.addf %62, %64 : vector<8x128xf32>
    %66 = math.tanh %65 : vector<8x128xf32>
    %c96 = arith.constant 96 : index
    %c0_36 = arith.constant 0 : index
    %67 = vector.load %arg0[%c96, %c0_36] : memref<128x128xf32, #tpu.memory_space<vmem>>, vector<8x128xf32>
    %68 = arith.truncf %66 : vector<8x128xf32> to vector<8x128xbf16>
    %cst_37 = arith.constant dense<0.000000e+00> : vector<8x128xf32>
    %69 = tpu.matmul %68, %0, %cst_37 {dimension_numbers = #tpu.dot_dimension_numbers<[1], [0], [0], [1], [0, 0, 1, 1], [], []>} : vector<8x128xbf16>, vector<128x128xbf16>, vector<8x128xf32> -> vector<8x128xf32>
    %70 = arith.addf %67, %69 : vector<8x128xf32>
    %71 = math.tanh %70 : vector<8x128xf32>
    %c104 = arith.constant 104 : index
    %c0_38 = arith.constant 0 : index
    %72 = vector.load %arg0[%c104, %c0_38] : memref<128x128xf32, #tpu.memory_space<vmem>>, vector<8x128xf32>
    %73 = arith.truncf %71 : vector<8x128xf32> to vector<8x128xbf16>
    %cst_39 = arith.constant dense<0.000000e+00> : vector<8x128xf32>
    %74 = tpu.matmul %73, %0, %cst_39 {dimension_numbers = #tpu.dot_dimension_numbers<[1], [0], [0], [1], [0, 0, 1, 1], [], []>} : vector<8x128xbf16>, vector<128x128xbf16>, vector<8x128xf32> -> vector<8x128xf32>
    %75 = arith.addf %72, %74 : vector<8x128xf32>
    %76 = math.tanh %75 : vector<8x128xf32>
    %c112 = arith.constant 112 : index
    %c0_40 = arith.constant 0 : index
    %77 = vector.load %arg0[%c112, %c0_40] : memref<128x128xf32, #tpu.memory_space<vmem>>, vector<8x128xf32>
    %78 = arith.truncf %76 : vector<8x128xf32> to vector<8x128xbf16>
    %cst_41 = arith.constant dense<0.000000e+00> : vector<8x128xf32>
    %79 = tpu.matmul %78, %0, %cst_41 {dimension_numbers = #tpu.dot_dimension_numbers<[1], [0], [0], [1], [0, 0, 1, 1], [], []>} : vector<8x128xbf16>, vector<128x128xbf16>, vector<8x128xf32> -> vector<8x128xf32>
    %80 = arith.addf %77, %79 : vector<8x128xf32>
    %81 = math.tanh %80 : vector<8x128xf32>
    %c120 = arith.constant 120 : index
    %c0_42 = arith.constant 0 : index
    %82 = vector.load %arg0[%c120, %c0_42] : memref<128x128xf32, #tpu.memory_space<vmem>>, vector<8x128xf32>
    %83 = arith.truncf %81 : vector<8x128xf32> to vector<8x128xbf16>
    %cst_43 = arith.constant dense<0.000000e+00> : vector<8x128xf32>
    %84 = tpu.matmul %83, %0, %cst_43 {dimension_numbers = #tpu.dot_dimension_numbers<[1], [0], [0], [1], [0, 0, 1, 1], [], []>} : vector<8x128xbf16>, vector<128x128xbf16>, vector<8x128xf32> -> vector<8x128xf32>
    %85 = arith.addf %82, %84 : vector<8x128xf32>
    %86 = math.tanh %85 : vector<8x128xf32>
    %87 = tpu.concatenate %46, %86 in 0 : vector<8x128xf32>, vector<8x128xf32> -> vector<16x128xf32>
    %88 = arith.truncf %87 : vector<16x128xf32> to vector<16x128xbf16>
    %cst_44 = arith.constant dense<0.000000e+00> : vector<16x128xf32>
    %89 = tpu.matmul %88, %1, %cst_44 {dimension_numbers = #tpu.dot_dimension_numbers<[1], [0], [0], [1], [0, 0, 1, 1], [], []>} : vector<16x128xbf16>, vector<128x128xbf16>, vector<16x128xf32> -> vector<16x128xf32>
    %90 = vector.broadcast %4 : vector<1x128xf32> to vector<16x128xf32>
    %91 = arith.addf %89, %90 : vector<16x128xf32>
    %cst_45 = arith.constant 0.000000e+00 : f32
    %92 = vector.broadcast %cst_45 : f32 to vector<6x128xf32>
    %93 = vector.extract_strided_slice %91 {offsets = [0, 0], sizes = [1, 128], strides = [1, 1]} : vector<16x128xf32> to vector<1x128xf32>
    %94 = vector.extract_strided_slice %91 {offsets = [8, 0], sizes = [1, 128], strides = [1, 1]} : vector<16x128xf32> to vector<1x128xf32>
    %95 = tpu.concatenate %93, %94, %92 in 0 : vector<1x128xf32>, vector<1x128xf32>, vector<6x128xf32> -> vector<8x128xf32>
    %96 = vector.extract_strided_slice %91 {offsets = [1, 0], sizes = [1, 128], strides = [1, 1]} : vector<16x128xf32> to vector<1x128xf32>
    %97 = vector.extract_strided_slice %91 {offsets = [9, 0], sizes = [1, 128], strides = [1, 1]} : vector<16x128xf32> to vector<1x128xf32>
    %98 = tpu.concatenate %96, %97, %92 in 0 : vector<1x128xf32>, vector<1x128xf32>, vector<6x128xf32> -> vector<8x128xf32>
    %99 = vector.extract_strided_slice %91 {offsets = [2, 0], sizes = [1, 128], strides = [1, 1]} : vector<16x128xf32> to vector<1x128xf32>
    %100 = vector.extract_strided_slice %91 {offsets = [10, 0], sizes = [1, 128], strides = [1, 1]} : vector<16x128xf32> to vector<1x128xf32>
    %101 = tpu.concatenate %99, %100, %92 in 0 : vector<1x128xf32>, vector<1x128xf32>, vector<6x128xf32> -> vector<8x128xf32>
    %102 = vector.extract_strided_slice %91 {offsets = [3, 0], sizes = [1, 128], strides = [1, 1]} : vector<16x128xf32> to vector<1x128xf32>
    %103 = vector.extract_strided_slice %91 {offsets = [11, 0], sizes = [1, 128], strides = [1, 1]} : vector<16x128xf32> to vector<1x128xf32>
    %104 = tpu.concatenate %102, %103, %92 in 0 : vector<1x128xf32>, vector<1x128xf32>, vector<6x128xf32> -> vector<8x128xf32>
    %105 = vector.extract_strided_slice %91 {offsets = [4, 0], sizes = [1, 128], strides = [1, 1]} : vector<16x128xf32> to vector<1x128xf32>
    %106 = vector.extract_strided_slice %91 {offsets = [12, 0], sizes = [1, 128], strides = [1, 1]} : vector<16x128xf32> to vector<1x128xf32>
    %107 = tpu.concatenate %105, %106, %92 in 0 : vector<1x128xf32>, vector<1x128xf32>, vector<6x128xf32> -> vector<8x128xf32>
    %108 = tpu.concatenate %95, %98, %101, %104, %107 in 0 : vector<8x128xf32>, vector<8x128xf32>, vector<8x128xf32>, vector<8x128xf32>, vector<8x128xf32> -> vector<40x128xf32>
    %c0_46 = arith.constant 0 : index
    %c0_47 = arith.constant 0 : index
    %109 = vector.load %arg8[%c0_46, %c0_47] : memref<40x128xf32, #tpu.memory_space<vmem>>, vector<40x128xf32>
    tpu.vector_store %arg8[%c0_46, %c0_47], %108 {strides = array<i32>} : memref<40x128xf32, #tpu.memory_space<vmem>>, vector<40x128xf32>,
    %cst_48 = arith.constant 0.000000e+00 : f32
    %110 = vector.broadcast %cst_48 : f32 to vector<8x128xf32>
    %c0_49 = arith.constant 0 : index
    %c0_50 = arith.constant 0 : index
    %111 = vector.load %arg8[%c0_49, %c0_50] : memref<40x128xf32, #tpu.memory_space<vmem>>, vector<8x128xf32>
    %112 = arith.truncf %110 : vector<8x128xf32> to vector<8x128xbf16>
    %cst_51 = arith.constant dense<0.000000e+00> : vector<8x128xf32>
    %113 = tpu.matmul %112, %2, %cst_51 {dimension_numbers = #tpu.dot_dimension_numbers<[1], [0], [0], [1], [0, 0, 1, 1], [], []>} : vector<8x128xbf16>, vector<128x128xbf16>, vector<8x128xf32> -> vector<8x128xf32>
    %114 = arith.addf %111, %113 : vector<8x128xf32>
    %115 = math.tanh %114 : vector<8x128xf32>
    %c8_52 = arith.constant 8 : index
    %c0_53 = arith.constant 0 : index
    %116 = vector.load %arg8[%c8_52, %c0_53] : memref<40x128xf32, #tpu.memory_space<vmem>>, vector<8x128xf32>
    %117 = arith.truncf %115 : vector<8x128xf32> to vector<8x128xbf16>
    %cst_54 = arith.constant dense<0.000000e+00> : vector<8x128xf32>
    %118 = tpu.matmul %117, %2, %cst_54 {dimension_numbers = #tpu.dot_dimension_numbers<[1], [0], [0], [1], [0, 0, 1, 1], [], []>} : vector<8x128xbf16>, vector<128x128xbf16>, vector<8x128xf32> -> vector<8x128xf32>
    %119 = arith.addf %116, %118 : vector<8x128xf32>
    %120 = math.tanh %119 : vector<8x128xf32>
    %c16_55 = arith.constant 16 : index
    %c0_56 = arith.constant 0 : index
    %121 = vector.load %arg8[%c16_55, %c0_56] : memref<40x128xf32, #tpu.memory_space<vmem>>, vector<8x128xf32>
    %122 = arith.truncf %120 : vector<8x128xf32> to vector<8x128xbf16>
    %cst_57 = arith.constant dense<0.000000e+00> : vector<8x128xf32>
    %123 = tpu.matmul %122, %2, %cst_57 {dimension_numbers = #tpu.dot_dimension_numbers<[1], [0], [0], [1], [0, 0, 1, 1], [], []>} : vector<8x128xbf16>, vector<128x128xbf16>, vector<8x128xf32> -> vector<8x128xf32>
    %124 = arith.addf %121, %123 : vector<8x128xf32>
    %125 = math.tanh %124 : vector<8x128xf32>
    %c24_58 = arith.constant 24 : index
    %c0_59 = arith.constant 0 : index
    %126 = vector.load %arg8[%c24_58, %c0_59] : memref<40x128xf32, #tpu.memory_space<vmem>>, vector<8x128xf32>
    %127 = arith.truncf %125 : vector<8x128xf32> to vector<8x128xbf16>
    %cst_60 = arith.constant dense<0.000000e+00> : vector<8x128xf32>
    %128 = tpu.matmul %127, %2, %cst_60 {dimension_numbers = #tpu.dot_dimension_numbers<[1], [0], [0], [1], [0, 0, 1, 1], [], []>} : vector<8x128xbf16>, vector<128x128xbf16>, vector<8x128xf32> -> vector<8x128xf32>
    %129 = arith.addf %126, %128 : vector<8x128xf32>
    %130 = math.tanh %129 : vector<8x128xf32>
    %c32_61 = arith.constant 32 : index
    %c0_62 = arith.constant 0 : index
    %131 = vector.load %arg8[%c32_61, %c0_62] : memref<40x128xf32, #tpu.memory_space<vmem>>, vector<8x128xf32>
    %132 = arith.truncf %130 : vector<8x128xf32> to vector<8x128xbf16>
    %cst_63 = arith.constant dense<0.000000e+00> : vector<8x128xf32>
    %133 = tpu.matmul %132, %2, %cst_63 {dimension_numbers = #tpu.dot_dimension_numbers<[1], [0], [0], [1], [0, 0, 1, 1], [], []>} : vector<8x128xbf16>, vector<128x128xbf16>, vector<8x128xf32> -> vector<8x128xf32>
    %134 = arith.addf %131, %133 : vector<8x128xf32>
    %135 = math.tanh %134 : vector<8x128xf32>
    %136 = vector.extract_strided_slice %135 {offsets = [0, 0], sizes = [2, 128], strides = [1, 1]} : vector<8x128xf32> to vector<2x128xf32>
    %137 = arith.truncf %136 : vector<2x128xf32> to vector<2x128xbf16>
    %cst_64 = arith.constant dense<0.000000e+00> : vector<2x16xf32>
    %138 = tpu.matmul %137, %3, %cst_64 {dimension_numbers = #tpu.dot_dimension_numbers<[1], [0], [0], [1], [0, 0, 1, 1], [], []>} : vector<2x128xbf16>, vector<128x16xbf16>, vector<2x16xf32> -> vector<2x16xf32>
    %139 = vector.broadcast %5 : vector<1x16xf32> to vector<2x16xf32>
    %140 = arith.addf %138, %139 : vector<2x16xf32>
    %c0_65 = arith.constant 0 : index
    %c0_66 = arith.constant 0 : index
    %141 = vector.load %arg7[%c0_65, %c0_66] : memref<2x16xf32, #tpu.memory_space<vmem>>, vector<2x16xf32>
    tpu.vector_store %arg7[%c0_65, %c0_66], %140 {strides = array<i32>} : memref<2x16xf32, #tpu.memory_space<vmem>>, vector<2x16xf32>,
    return
  }
}

</mosaic_0001>

<bundles_post_ra>
// kernel: tpu_custom_call.1
= control target key start
LH: loop header
LB: loop body
LE: loop exit
PB: predicated region body
PF: predicated region fallthrough
CT: control target
= control target key end

     0   :  { %12 = vsyncpa [#allocation4], 0  ;;  %s2889_s0 = inlined_call_operand.hbm [shape: f32[128,128], index: 0, kind: input, shape index: {}]   ;;  %s2890_s1 = inlined_call_operand.vmem [shape: bf16[128,128], index: 1, kind: input, shape index: {}]   ;;  %s2891_s2 = inlined_call_operand.hbm [shape: bf16[128,128], index: 2, kind: input, shape index: {}]   ;;  %s2892_s3 = inlined_call_operand.hbm [shape: bf16[128,128], index: 3, kind: input, shape index: {}]   ;;  %s2893_s4 = inlined_call_operand.vmem [shape: f32[1,128], index: 4, kind: input, shape index: {}]   ;;  %s2894_s5 = inlined_call_operand.vmem [shape: bf16[128,16], index: 5, kind: input, shape index: {}]   ;;  %s2895_s6 = inlined_call_operand.vmem [shape: f32[1,16], index: 6, kind: input, shape index: {}]   ;;  %s2896_s7 = inlined_call_operand.hbm [shape: f32[2,16], index: 7, kind: output, shape index: {}]  }
   0x1   :  { %13 = vsyncpa [#allocation7], 0 }
   0x2   :  { %14 = vsyncpa [#allocation5], 0  ;;  %s2277_s24 = smov [#allocation6]   ;;  %s2183_s28 = scalar_lea.hbm %s2891_s2, 1024 }
   0x3   :  { %s34_s25 = sshll.u32 %s2277_s24, 4  ;;  %p2184_p0 = scmp.ne.s32.totalorder %s2891_s2, %s2183_s28  ;;  %s35_s25 = int_to_ptr.vmem [resolvable:$true] %s34_s25 }
   0x4   :  { %p2187_p1 = scmp.lt.u32.totalorder %s2183_s28, %s2891_s2 }
   0x6   :  { %p2189_p2 = pnand %p2187_p1, %p2184_p0 }
   0x8   :  { %2192 = shalt.err (!%p2189_p2)
}
   0x9   :  { %s2193_s10 = scalar_lea.vmem %s35_s25, 1024  ;;  %p2198_p4 = scmp.lt.s32.totalorder %s35_s25, %s35_s25 }
   0xa   :  { %p2194_p3 = scmp.ne.s32.totalorder %s35_s25, %s2193_s10  ;;  %p2199_p5 = scmp.lt.s32.totalorder %s2193_s10, %s2193_s10 }
   0xc   :  { %p2200_p6 = por %p2199_p5, %p2198_p4 }
   0xe   :  { %p2201_p7 = pnand %p2200_p6, %p2194_p3 }
  0x10   :  { %2204 = shalt.err (!%p2201_p7)
}
  0x11   :  { %s2278_s11 = smov 64   ;;  %s2279_s12 = smov 4  }
  0x12   :  { %40 = dma.hbm_to_vmem [thread:$0]  %s2891_s2, 1024, %s35_s25, [#allocation7], %s2278_s11, %s2278_s11, %s2279_s12  }
  0x13   :  { %s2280_s15 = smov [#allocation3]   ;;  %s2205_s19 = scalar_lea.hbm %s2889_s0, 2048 }
  0x14   :  { %s20_s16 = sshll.u32 %s2280_s15, 4  ;;  %p2206_p8 = scmp.ne.s32.totalorder %s2889_s0, %s2205_s19  ;;  %s21_s16 = int_to_ptr.vmem [resolvable:$true] %s20_s16 }
  0x15   :  { %p2209_p9 = scmp.lt.u32.totalorder %s2205_s19, %s2889_s0 }
  0x17   :  { %p2211_p10 = pnand %p2209_p9, %p2206_p8 }
  0x19   :  { %2214 = shalt.err (!%p2211_p10)
}
  0x1a   :  { %s2215_s24 = scalar_lea.vmem %s21_s16, 2048  ;;  %p2220_p12 = scmp.lt.s32.totalorder %s21_s16, %s21_s16 }
  0x1b   :  { %p2216_p11 = scmp.ne.s32.totalorder %s21_s16, %s2215_s24  ;;  %p2221_p13 = scmp.lt.s32.totalorder %s2215_s24, %s2215_s24 }
  0x1d   :  { %p2222_p0 = por %p2221_p13, %p2220_p12 }
  0x1f   :  { %p2223_p1 = pnand %p2222_p0, %p2216_p11 }
  0x21   :  { %2226 = shalt.err (!%p2223_p1)
}
  0x22   :  { %s2281_s2 = smov 128   ;;  %s2282_s25 = smov 8  }
  0x23   :  { %26 = dma.hbm_to_vmem [thread:$0]  %s2889_s0, 2048, %s21_s16, [#allocation4], %s2281_s2, %s2281_s2, %s2282_s25  }
  0x24   :  { %s2283_s28 = smov [#allocation8]   ;;  %s2227_s9 = scalar_lea.hbm %s2892_s3, 1024 }
  0x25   :  { %s46_s29 = sshll.u32 %s2283_s28, 4  ;;  %p2228_p2 = scmp.ne.s32.totalorder %s2892_s3, %s2227_s9  ;;  %s47_s29 = int_to_ptr.vmem [resolvable:$true] %s46_s29 }
  0x26   :  { %p2231_p3 = scmp.lt.u32.totalorder %s2227_s9, %s2892_s3 }
  0x28   :  { %p2233_p4 = pnand %p2231_p3, %p2228_p2 }
  0x2a   :  { %2236 = shalt.err (!%p2233_p4)
}
  0x2b   :  { %s2237_s17 = scalar_lea.vmem %s47_s29, 1024  ;;  %p2242_p6 = scmp.lt.s32.totalorder %s47_s29, %s47_s29 }
  0x2c   :  { %p2238_p5 = scmp.ne.s32.totalorder %s47_s29, %s2237_s17  ;;  %p2243_p7 = scmp.lt.s32.totalorder %s2237_s17, %s2237_s17 }
  0x2e   :  { %p2244_p8 = por %p2243_p7, %p2242_p6 }
  0x30   :  { %p2245_p9 = pnand %p2244_p8, %p2238_p5 }
  0x32   :  { %2248 = shalt.err (!%p2245_p9)
}
  0x33   :  { %52 = dma.hbm_to_vmem [thread:$0]  %s2892_s3, 1024, %s47_s29, [#allocation7], %s2278_s11, %s2278_s11, %s2279_s12  }
  0x34   :  { %2271 = dma.done.wait [#allocation4], 2048  }
  0x35   :  { %2272 = vsyncadd [#allocation4], 4294965248 }
  0x36   :  { %2273 = dma.done.wait [#allocation7], 2048  }
  0x37   :  { %2274 = vsyncadd [#allocation7], 4294965248  ;;  %v2284_v0 = vmov 0.0   ;;  %vm2285_vm0 = vmmov 0   ;;  %v2379_v1 = vld [vmem:[%s2890_s1] sm:$0xff]   ;;  %v2385_v2 = vld [vmem:[%s2890_s1 + $0x8] sm:$0xff]  }
  0x38   :  { %1638 = vmatprep.subr.bf16.mxu0 %v2284_v0  ;;  %1654 = vmatprep.mubr.msk.bf16.mxu0 %vm2285_vm0, %v2284_v0  ;;  %v2394_v3 = vld [vmem:[%s2890_s1 + $0x10] sm:$0xff]   ;;  %v2402_v4 = vld [vmem:[%s2890_s1 + $0x18] sm:$0xff]   ;;  %v2411_v5 = vld [vmem:[%s2890_s1 + $0x20] sm:$0xff]   ;;  %v2286_v9 = vmov 0   ;;  %vm985_vm1 = vcmask 1040384   ;;  %vm987_vm2 = vcmask 1041408  }
  0x39   :  { %1658 = vmatprep.subr.bf16.mxu1 %v2284_v0  ;;  %1674 = vmatprep.mubr.msk.bf16.mxu1 %vm2285_vm0, %v2284_v0  ;;  %v2420_v6 = vld [vmem:[%s2890_s1 + $0x28] sm:$0xff]   ;;  %v2429_v7 = vld [vmem:[%s2890_s1 + $0x30] sm:$0xff]   ;;  %v2439_v8 = vld [vmem:[%s2890_s1 + $0x38] sm:$0xff]   ;;  %s2287_s23 = smov [#allocation9]   ;;  %vm1379_vm3 = vcmask 123904  }
  0x3a   :  { %1639 = vmatpush3.bf16.msra.mxu0 %v2379_v1  ;;  %1659 = vmatpush3.bf16.msra.mxu1 %v2379_v1  ;;  %v135_v10 = vld [vmem:[#allocation3] sm:$0xff]  ;;  %v226_v18 = vld [vmem:[#allocation3 + $0x8] sm:$0xff]  ;;  %v270_v26 = vld [vmem:[#allocation3 + $0x10] sm:$0xff]  ;;  %s1387_s24 = sshll.u32 %s2287_s23, 4  ;;  %s1388_s24 = int_to_ptr.vmem [resolvable:$true] %s1387_s24 }
  0x3b   :  { %1640 = vmatprep.subr.bf16.mxu0 %v2284_v0  ;;  %1660 = vmatprep.subr.bf16.mxu1 %v2284_v0  ;;  %v314_v34 = vld [vmem:[#allocation3 + $0x18] sm:$0xff]  ;;  %v358_v42 = vld [vmem:[#allocation3 + $0x20] sm:$0xff]  ;;  %v402_v50 = vld [vmem:[#allocation3 + $0x28] sm:$0xff]  ;;  %p2254_p11 = scmp.lt.s32.totalorder %s1388_s24, %s1388_s24 }
  0x3c   :  { %v446_v58 = vld [vmem:[#allocation3 + $0x30] sm:$0xff] }
  0x3e   :  { %1641 = vmatpush3.bf16.msra.mxu0 %v2385_v2  ;;  %1661 = vmatpush3.bf16.msra.mxu1 %v2385_v2 }
  0x3f   :  { %1642 = vmatprep.subr.bf16.mxu0 %v2284_v0  ;;  %1662 = vmatprep.subr.bf16.mxu1 %v2284_v0 }
  0x42   :  { %1643 = vmatpush3.bf16.msra.mxu0 %v2394_v3  ;;  %1663 = vmatpush3.bf16.msra.mxu1 %v2394_v3 }
  0x43   :  { %1644 = vmatprep.subr.bf16.mxu0 %v2284_v0  ;;  %1664 = vmatprep.subr.bf16.mxu1 %v2284_v0 }
  0x46   :  { %1645 = vmatpush3.bf16.msra.mxu0 %v2402_v4  ;;  %1665 = vmatpush3.bf16.msra.mxu1 %v2402_v4 }
  0x47   :  { %1646 = vmatprep.subr.bf16.mxu0 %v2284_v0  ;;  %1666 = vmatprep.subr.bf16.mxu1 %v2284_v0 }
  0x4a   :  { %1647 = vmatpush3.bf16.msra.mxu0 %v2411_v5  ;;  %1667 = vmatpush3.bf16.msra.mxu1 %v2411_v5 }
  0x4b   :  { %1648 = vmatprep.subr.bf16.mxu0 %v2284_v0  ;;  %1668 = vmatprep.subr.bf16.mxu1 %v2284_v0 }
  0x4e   :  { %1649 = vmatpush3.bf16.msra.mxu0 %v2420_v6  ;;  %1669 = vmatpush3.bf16.msra.mxu1 %v2420_v6 }
  0x4f   :  { %1650 = vmatprep.subr.bf16.mxu0 %v2284_v0  ;;  %1670 = vmatprep.subr.bf16.mxu1 %v2284_v0 }
  0x52   :  { %1651 = vmatpush3.bf16.msra.mxu0 %v2429_v7  ;;  %1671 = vmatpush3.bf16.msra.mxu1 %v2429_v7 }
  0x53   :  { %1652 = vmatprep.subr.bf16.mxu0 %v2284_v0  ;;  %1672 = vmatprep.subr.bf16.mxu1 %v2284_v0 }
  0x56   :  { %1653 = vmatpush3.bf16.msra.mxu0 %v2439_v8  ;;  %1673 = vmatpush3.bf16.msra.mxu1 %v2439_v8 }
  0x57   :  { %1678 = vmatprep.subr.bf16.mxu0 %v2284_v0  ;;  %1698 = vmatprep.subr.bf16.mxu1 %v2284_v0 }
  0x59   :  { %1655 = vmatmul.mubr.bf16.vlgmr.msra.gmra.mrb[0].mxu0 %v2286_v9 }
  0x5a   :  { %1679 = vmatpush3.bf16.msra.mxu0 %v2379_v1  ;;  %1694 = vmatprep.mubr.msk.bf16.mxu0 %vm2285_vm0, %v2284_v0 }
  0x5b   :  { %1680 = vmatprep.subr.bf16.mxu0 %v2284_v0 }
  0x5e   :  { %1681 = vmatpush3.bf16.msra.mxu0 %v2385_v2 }
  0x5f   :  { %1682 = vmatprep.subr.bf16.mxu0 %v2284_v0 }
  0x62   :  { %1683 = vmatpush3.bf16.msra.mxu0 %v2394_v3 }
  0x63   :  { %1684 = vmatprep.subr.bf16.mxu0 %v2284_v0 }
  0x66   :  { %1685 = vmatpush3.bf16.msra.mxu0 %v2402_v4 }
  0x67   :  { %1686 = vmatprep.subr.bf16.mxu0 %v2284_v0 }
  0x6a   :  { %1687 = vmatpush3.bf16.msra.mxu0 %v2411_v5 }
  0x6b   :  { %1688 = vmatprep.subr.bf16.mxu0 %v2284_v0 }
  0x6e   :  { %1689 = vmatpush3.bf16.msra.mxu0 %v2420_v6 }
  0x6f   :  { %1690 = vmatprep.subr.bf16.mxu0 %v2284_v0 }
  0x72   :  { %1691 = vmatpush3.bf16.msra.mxu0 %v2429_v7 }
  0x73   :  { %1692 = vmatprep.subr.bf16.mxu0 %v2284_v0 }
  0x76   :  { %1693 = vmatpush3.bf16.msra.mxu0 %v2439_v8 }
  0x77   :  { %1718 = vmatprep.subr.bf16.mxu0 %v2284_v0 }
 0x12c   :  { %v218_v11 = vpop.f32.mrb[0].mxu0 }
 0x12d   :  { %v224_v12 = vadd.f32 %v218_v11, %v135_v10  ;;  %v1656_v13 = vpop.f32.mrb[1].mxu0 }
 0x12e   :  { %v221_v14 = vpop.f32.mrb[2].mxu0 }
 0x12f   :  { %2141 = vtanh.f32 %v224_v12  ;;  %v1657_v15 = vpop.f32.mrb[3].mxu0  ;;  %v490_v12 = vld [vmem:[#allocation3 + $0x38] sm:$0xff] }
 0x139   :  { %v2142_v16 = vpop.eup %2141 }
 0x13a   :  { %v227_v17 = vpack.c.bf16 %v2142_v16, %v2142_v16 }
 0x13c   :  { %1675 = vmatmul.mubr.bf16.vlgmr.msra.gmra.mrb[0].mxu1 %v227_v17 }
 0x13d   :  { %1699 = vmatpush3.bf16.msra.mxu1 %v2379_v1  ;;  %1714 = vmatprep.mubr.msk.bf16.mxu1 %vm2285_vm0, %v2284_v0 }
 0x13e   :  { %1700 = vmatprep.subr.bf16.mxu1 %v2284_v0 }
 0x141   :  { %1701 = vmatpush3.bf16.msra.mxu1 %v2385_v2 }
 0x142   :  { %1702 = vmatprep.subr.bf16.mxu1 %v2284_v0 }
 0x145   :  { %1703 = vmatpush3.bf16.msra.mxu1 %v2394_v3 }
 0x146   :  { %1704 = vmatprep.subr.bf16.mxu1 %v2284_v0 }
 0x149   :  { %1705 = vmatpush3.bf16.msra.mxu1 %v2402_v4 }
 0x14a   :  { %1706 = vmatprep.subr.bf16.mxu1 %v2284_v0 }
 0x14d   :  { %1707 = vmatpush3.bf16.msra.mxu1 %v2411_v5 }
 0x14e   :  { %1708 = vmatprep.subr.bf16.mxu1 %v2284_v0 }
 0x151   :  { %1709 = vmatpush3.bf16.msra.mxu1 %v2420_v6 }
 0x152   :  { %1710 = vmatprep.subr.bf16.mxu1 %v2284_v0 }
 0x155   :  { %1711 = vmatpush3.bf16.msra.mxu1 %v2429_v7 }
 0x156   :  { %1712 = vmatprep.subr.bf16.mxu1 %v2284_v0 }
 0x159   :  { %1713 = vmatpush3.bf16.msra.mxu1 %v2439_v8 }
 0x15a   :  { %1738 = vmatprep.subr.bf16.mxu1 %v2284_v0 }
 0x20f   :  { %v262_v19 = vpop.f32.mrb[0].mxu1 }
 0x210   :  { %v268_v20 = vadd.f32 %v262_v19, %v226_v18  ;;  %v1676_v21 = vpop.f32.mrb[1].mxu1 }
 0x211   :  { %v265_v22 = vpop.f32.mrb[2].mxu1 }
 0x212   :  { %2143 = vtanh.f32 %v268_v20  ;;  %v1677_v23 = vpop.f32.mrb[3].mxu1  ;;  %v534_v20 = vld [vmem:[#allocation3 + $0x40] sm:$0xff] }
 0x21c   :  { %v2144_v24 = vpop.eup %2143 }
 0x21d   :  { %v271_v25 = vpack.c.bf16 %v2144_v24, %v2144_v24 }
 0x21f   :  { %1695 = vmatmul.mubr.bf16.vlgmr.msra.gmra.mrb[4].mxu0 %v271_v25 }
 0x220   :  { %1719 = vmatpush3.bf16.msra.mxu0 %v2379_v1  ;;  %1734 = vmatprep.mubr.msk.bf16.mxu0 %vm2285_vm0, %v2284_v0 }
 0x221   :  { %1720 = vmatprep.subr.bf16.mxu0 %v2284_v0 }
 0x224   :  { %1721 = vmatpush3.bf16.msra.mxu0 %v2385_v2 }
 0x225   :  { %1722 = vmatprep.subr.bf16.mxu0 %v2284_v0 }
 0x228   :  { %1723 = vmatpush3.bf16.msra.mxu0 %v2394_v3 }
 0x229   :  { %1724 = vmatprep.subr.bf16.mxu0 %v2284_v0 }
 0x22c   :  { %1725 = vmatpush3.bf16.msra.mxu0 %v2402_v4 }
 0x22d   :  { %1726 = vmatprep.subr.bf16.mxu0 %v2284_v0 }
 0x230   :  { %1727 = vmatpush3.bf16.msra.mxu0 %v2411_v5 }
 0x231   :  { %1728 = vmatprep.subr.bf16.mxu0 %v2284_v0 }
 0x234   :  { %1729 = vmatpush3.bf16.msra.mxu0 %v2420_v6 }
 0x235   :  { %1730 = vmatprep.subr.bf16.mxu0 %v2284_v0 }
 0x238   :  { %1731 = vmatpush3.bf16.msra.mxu0 %v2429_v7 }
 0x239   :  { %1732 = vmatprep.subr.bf16.mxu0 %v2284_v0 }
 0x23c   :  { %1733 = vmatpush3.bf16.msra.mxu0 %v2439_v8 }
 0x23d   :  { %1758 = vmatprep.subr.bf16.mxu0 %v2284_v0 }
 0x2f2   :  { %v306_v27 = vpop.f32.mrb[4].mxu0 }
 0x2f3   :  { %v312_v28 = vadd.f32 %v306_v27, %v270_v26  ;;  %v1696_v29 = vpop.f32.mrb[5].mxu0 }
 0x2f4   :  { %v309_v30 = vpop.f32.mrb[6].mxu0 }
 0x2f5   :  { %2145 = vtanh.f32 %v312_v28  ;;  %v1697_v31 = vpop.f32.mrb[7].mxu0  ;;  %v578_v28 = vld [vmem:[#allocation3 + $0x48] sm:$0xff] }
 0x2ff   :  { %v2146_v32 = vpop.eup %2145 }
 0x300   :  { %v315_v33 = vpack.c.bf16 %v2146_v32, %v2146_v32 }
 0x302   :  { %1715 = vmatmul.mubr.bf16.vlgmr.msra.gmra.mrb[4].mxu1 %v315_v33 }
 0x303   :  { %1739 = vmatpush3.bf16.msra.mxu1 %v2379_v1  ;;  %1754 = vmatprep.mubr.msk.bf16.mxu1 %vm2285_vm0, %v2284_v0 }
 0x304   :  { %1740 = vmatprep.subr.bf16.mxu1 %v2284_v0 }
 0x307   :  { %1741 = vmatpush3.bf16.msra.mxu1 %v2385_v2 }
 0x308   :  { %1742 = vmatprep.subr.bf16.mxu1 %v2284_v0 }
 0x30b   :  { %1743 = vmatpush3.bf16.msra.mxu1 %v2394_v3 }
 0x30c   :  { %1744 = vmatprep.subr.bf16.mxu1 %v2284_v0 }
 0x30f   :  { %1745 = vmatpush3.bf16.msra.mxu1 %v2402_v4 }
 0x310   :  { %1746 = vmatprep.subr.bf16.mxu1 %v2284_v0 }
 0x313   :  { %1747 = vmatpush3.bf16.msra.mxu1 %v2411_v5 }
 0x314   :  { %1748 = vmatprep.subr.bf16.mxu1 %v2284_v0 }
 0x317   :  { %1749 = vmatpush3.bf16.msra.mxu1 %v2420_v6 }
 0x318   :  { %1750 = vmatprep.subr.bf16.mxu1 %v2284_v0 }
 0x31b   :  { %1751 = vmatpush3.bf16.msra.mxu1 %v2429_v7 }
 0x31c   :  { %1752 = vmatprep.subr.bf16.mxu1 %v2284_v0 }
 0x31f   :  { %1753 = vmatpush3.bf16.msra.mxu1 %v2439_v8 }
 0x320   :  { %1778 = vmatprep.subr.bf16.mxu1 %v2284_v0 }
 0x3d5   :  { %v350_v35 = vpop.f32.mrb[4].mxu1 }
 0x3d6   :  { %v356_v36 = vadd.f32 %v350_v35, %v314_v34  ;;  %v1716_v37 = vpop.f32.mrb[5].mxu1 }
 0x3d7   :  { %v353_v38 = vpop.f32.mrb[6].mxu1 }
 0x3d8   :  { %2147 = vtanh.f32 %v356_v36  ;;  %v1717_v39 = vpop.f32.mrb[7].mxu1  ;;  %v622_v36 = vld [vmem:[#allocation3 + $0x50] sm:$0xff] }
 0x3e2   :  { %v2148_v40 = vpop.eup %2147 }
 0x3e3   :  { %v359_v41 = vpack.c.bf16 %v2148_v40, %v2148_v40 }
 0x3e5   :  { %1735 = vmatmul.mubr.bf16.vlgmr.msra.gmra.mrb[8].mxu0 %v359_v41 }
 0x3e6   :  { %1759 = vmatpush3.bf16.msra.mxu0 %v2379_v1  ;;  %1774 = vmatprep.mubr.msk.bf16.mxu0 %vm2285_vm0, %v2284_v0 }
 0x3e7   :  { %1760 = vmatprep.subr.bf16.mxu0 %v2284_v0 }
 0x3ea   :  { %1761 = vmatpush3.bf16.msra.mxu0 %v2385_v2 }
 0x3eb   :  { %1762 = vmatprep.subr.bf16.mxu0 %v2284_v0 }
 0x3ee   :  { %1763 = vmatpush3.bf16.msra.mxu0 %v2394_v3 }
 0x3ef   :  { %1764 = vmatprep.subr.bf16.mxu0 %v2284_v0 }
 0x3f2   :  { %1765 = vmatpush3.bf16.msra.mxu0 %v2402_v4 }
 0x3f3   :  { %1766 = vmatprep.subr.bf16.mxu0 %v2284_v0 }
 0x3f6   :  { %1767 = vmatpush3.bf16.msra.mxu0 %v2411_v5 }
 0x3f7   :  { %1768 = vmatprep.subr.bf16.mxu0 %v2284_v0 }
 0x3fa   :  { %1769 = vmatpush3.bf16.msra.mxu0 %v2420_v6 }
 0x3fb   :  { %1770 = vmatprep.subr.bf16.mxu0 %v2284_v0 }
 0x3fe   :  { %1771 = vmatpush3.bf16.msra.mxu0 %v2429_v7 }
 0x3ff   :  { %1772 = vmatprep.subr.bf16.mxu0 %v2284_v0 }
 0x402   :  { %1773 = vmatpush3.bf16.msra.mxu0 %v2439_v8 }
 0x403   :  { %1798 = vmatprep.subr.bf16.mxu0 %v2284_v0 }
 0x4b8   :  { %v394_v43 = vpop.f32.mrb[8].mxu0 }
 0x4b9   :  { %v400_v44 = vadd.f32 %v394_v43, %v358_v42  ;;  %v1736_v45 = vpop.f32.mrb[9].mxu0 }
 0x4ba   :  { %v397_v46 = vpop.f32.mrb[10].mxu0 }
 0x4bb   :  { %2149 = vtanh.f32 %v400_v44  ;;  %v1737_v47 = vpop.f32.mrb[11].mxu0  ;;  %v666_v44 = vld [vmem:[#allocation3 + $0x58] sm:$0xff] }
 0x4c5   :  { %v2150_v48 = vpop.eup %2149 }
 0x4c6   :  { %v403_v49 = vpack.c.bf16 %v2150_v48, %v2150_v48 }
 0x4c8   :  { %1755 = vmatmul.mubr.bf16.vlgmr.msra.gmra.mrb[8].mxu1 %v403_v49 }
 0x4c9   :  { %1779 = vmatpush3.bf16.msra.mxu1 %v2379_v1  ;;  %1794 = vmatprep.mubr.msk.bf16.mxu1 %vm2285_vm0, %v2284_v0 }
 0x4ca   :  { %1780 = vmatprep.subr.bf16.mxu1 %v2284_v0 }
 0x4cd   :  { %1781 = vmatpush3.bf16.msra.mxu1 %v2385_v2 }
 0x4ce   :  { %1782 = vmatprep.subr.bf16.mxu1 %v2284_v0 }
 0x4d1   :  { %1783 = vmatpush3.bf16.msra.mxu1 %v2394_v3 }
 0x4d2   :  { %1784 = vmatprep.subr.bf16.mxu1 %v2284_v0 }
 0x4d5   :  { %1785 = vmatpush3.bf16.msra.mxu1 %v2402_v4 }
 0x4d6   :  { %1786 = vmatprep.subr.bf16.mxu1 %v2284_v0 }
 0x4d9   :  { %1787 = vmatpush3.bf16.msra.mxu1 %v2411_v5 }
 0x4da   :  { %1788 = vmatprep.subr.bf16.mxu1 %v2284_v0 }
 0x4dd   :  { %1789 = vmatpush3.bf16.msra.mxu1 %v2420_v6 }
 0x4de   :  { %1790 = vmatprep.subr.bf16.mxu1 %v2284_v0 }
 0x4e1   :  { %1791 = vmatpush3.bf16.msra.mxu1 %v2429_v7 }
 0x4e2   :  { %1792 = vmatprep.subr.bf16.mxu1 %v2284_v0 }
 0x4e5   :  { %1793 = vmatpush3.bf16.msra.mxu1 %v2439_v8 }
 0x4e6   :  { %1818 = vmatprep.subr.bf16.mxu1 %v2284_v0 }
 0x59b   :  { %v438_v51 = vpop.f32.mrb[8].mxu1 }
 0x59c   :  { %v444_v52 = vadd.f32 %v438_v51, %v402_v50  ;;  %v1756_v53 = vpop.f32.mrb[9].mxu1 }
 0x59d   :  { %v441_v54 = vpop.f32.mrb[10].mxu1 }
 0x59e   :  { %2151 = vtanh.f32 %v444_v52  ;;  %v1757_v55 = vpop.f32.mrb[11].mxu1  ;;  %v710_v52 = vld [vmem:[#allocation3 + $0x60] sm:$0xff] }
 0x5a8   :  { %v2152_v56 = vpop.eup %2151 }
 0x5a9   :  { %v447_v57 = vpack.c.bf16 %v2152_v56, %v2152_v56 }
 0x5ab   :  { %1775 = vmatmul.mubr.bf16.vlgmr.msra.gmra.mrb[12].mxu0 %v447_v57 }
 0x5ac   :  { %1799 = vmatpush3.bf16.msra.mxu0 %v2379_v1  ;;  %1814 = vmatprep.mubr.msk.bf16.mxu0 %vm2285_vm0, %v2284_v0 }
 0x5ad   :  { %1800 = vmatprep.subr.bf16.mxu0 %v2284_v0 }
 0x5b0   :  { %1801 = vmatpush3.bf16.msra.mxu0 %v2385_v2 }
 0x5b1   :  { %1802 = vmatprep.subr.bf16.mxu0 %v2284_v0 }
 0x5b4   :  { %1803 = vmatpush3.bf16.msra.mxu0 %v2394_v3 }
 0x5b5   :  { %1804 = vmatprep.subr.bf16.mxu0 %v2284_v0 }
 0x5b8   :  { %1805 = vmatpush3.bf16.msra.mxu0 %v2402_v4 }
 0x5b9   :  { %1806 = vmatprep.subr.bf16.mxu0 %v2284_v0 }
 0x5bc   :  { %1807 = vmatpush3.bf16.msra.mxu0 %v2411_v5 }
 0x5bd   :  { %1808 = vmatprep.subr.bf16.mxu0 %v2284_v0 }
 0x5c0   :  { %1809 = vmatpush3.bf16.msra.mxu0 %v2420_v6 }
 0x5c1   :  { %1810 = vmatprep.subr.bf16.mxu0 %v2284_v0 }
 0x5c4   :  { %1811 = vmatpush3.bf16.msra.mxu0 %v2429_v7 }
 0x5c5   :  { %1812 = vmatprep.subr.bf16.mxu0 %v2284_v0 }
 0x5c8   :  { %1813 = vmatpush3.bf16.msra.mxu0 %v2439_v8 }
 0x5c9   :  { %1838 = vmatprep.subr.bf16.mxu0 %v2284_v0 }
 0x67e   :  { %v482_v59 = vpop.f32.mrb[12].mxu0 }
 0x67f   :  { %v488_v60 = vadd.f32 %v482_v59, %v446_v58  ;;  %v1776_v61 = vpop.f32.mrb[13].mxu0 }
 0x680   :  { %v485_v62 = vpop.f32.mrb[14].mxu0 }
 0x681   :  { %2153 = vtanh.f32 %v488_v60  ;;  %v1777_v63 = vpop.f32.mrb[15].mxu0 }
 0x682   :  { %v2122_v63 = vld [vmem:[#allocation6 + $0x18] sm:$0xff]  }
 0x68b   :  { %v2154_v10 = vpop.eup %2153 }
 0x68c   :  { %v491_v11 = vpack.c.bf16 %v2154_v10, %v2154_v10  ;;  %v798_v10 = vld [vmem:[#allocation3 + $0x70] sm:$0xff] }
 0x68e   :  { %1795 = vmatmul.mubr.bf16.vlgmr.msra.gmra.mrb[12].mxu1 %v491_v11 }
 0x68f   :  { %1819 = vmatpush3.bf16.msra.mxu1 %v2379_v1  ;;  %1834 = vmatprep.mubr.msk.bf16.mxu1 %vm2285_vm0, %v2284_v0 }
 0x690   :  { %1820 = vmatprep.subr.bf16.mxu1 %v2284_v0 }
 0x693   :  { %1821 = vmatpush3.bf16.msra.mxu1 %v2385_v2 }
 0x694   :  { %1822 = vmatprep.subr.bf16.mxu1 %v2284_v0 }
 0x697   :  { %1823 = vmatpush3.bf16.msra.mxu1 %v2394_v3 }
 0x698   :  { %1824 = vmatprep.subr.bf16.mxu1 %v2284_v0 }
 0x69b   :  { %1825 = vmatpush3.bf16.msra.mxu1 %v2402_v4 }
 0x69c   :  { %1826 = vmatprep.subr.bf16.mxu1 %v2284_v0 }
 0x69f   :  { %1827 = vmatpush3.bf16.msra.mxu1 %v2411_v5 }
 0x6a0   :  { %1828 = vmatprep.subr.bf16.mxu1 %v2284_v0 }
 0x6a3   :  { %1829 = vmatpush3.bf16.msra.mxu1 %v2420_v6 }
 0x6a4   :  { %1830 = vmatprep.subr.bf16.mxu1 %v2284_v0 }
 0x6a7   :  { %1831 = vmatpush3.bf16.msra.mxu1 %v2429_v7 }
 0x6a8   :  { %1832 = vmatprep.subr.bf16.mxu1 %v2284_v0 }
 0x6ab   :  { %1833 = vmatpush3.bf16.msra.mxu1 %v2439_v8 }
 0x6ac   :  { %1858 = vmatprep.subr.bf16.mxu1 %v2284_v0 }
 0x761   :  { %v526_v13 = vpop.f32.mrb[12].mxu1 }
 0x762   :  { %v532_v14 = vadd.f32 %v526_v13, %v490_v12  ;;  %v1796_v15 = vpop.f32.mrb[13].mxu1 }
 0x763   :  { %v529_v16 = vpop.f32.mrb[14].mxu1 }
 0x764   :  { %2155 = vtanh.f32 %v532_v14  ;;  %v1797_v17 = vpop.f32.mrb[15].mxu1 }
 0x765   :  { %v2711_v17 = vld [vmem:[#allocation8] sm:$0xff]  }
 0x76e   :  { %v2593_v18 = vpop.eup %2155 }
 0x76f   :  { %v535_v19 = vpack.c.bf16 %v2593_v18, %v2593_v18 }
 0x771   :  { %1815 = vmatmul.mubr.bf16.vlgmr.msra.gmra.mrb[16].mxu0 %v535_v19 }
 0x772   :  { %1839 = vmatpush3.bf16.msra.mxu0 %v2379_v1  ;;  %1854 = vmatprep.mubr.msk.bf16.mxu0 %vm2285_vm0, %v2284_v0 }
 0x773   :  { %1840 = vmatprep.subr.bf16.mxu0 %v2284_v0 }
 0x776   :  { %1841 = vmatpush3.bf16.msra.mxu0 %v2385_v2 }
 0x777   :  { %1842 = vmatprep.subr.bf16.mxu0 %v2284_v0 }
 0x77a   :  { %1843 = vmatpush3.bf16.msra.mxu0 %v2394_v3 }
 0x77b   :  { %1844 = vmatprep.subr.bf16.mxu0 %v2284_v0 }
 0x77e   :  { %1845 = vmatpush3.bf16.msra.mxu0 %v2402_v4 }
 0x77f   :  { %1846 = vmatprep.subr.bf16.mxu0 %v2284_v0 }
 0x782   :  { %1847 = vmatpush3.bf16.msra.mxu0 %v2411_v5 }
 0x783   :  { %1848 = vmatprep.subr.bf16.mxu0 %v2284_v0 }
 0x786   :  { %1849 = vmatpush3.bf16.msra.mxu0 %v2420_v6 }
 0x787   :  { %1850 = vmatprep.subr.bf16.mxu0 %v2284_v0 }
 0x78a   :  { %1851 = vmatpush3.bf16.msra.mxu0 %v2429_v7 }
 0x78b   :  { %1852 = vmatprep.subr.bf16.mxu0 %v2284_v0 }
 0x78e   :  { %1853 = vmatpush3.bf16.msra.mxu0 %v2439_v8 }
 0x78f   :  { %1878 = vmatprep.subr.bf16.mxu0 %v2284_v0 }
 0x844   :  { %v570_v21 = vpop.f32.mrb[16].mxu0 }
 0x845   :  { %v576_v22 = vadd.f32 %v570_v21, %v534_v20  ;;  %v1816_v23 = vpop.f32.mrb[17].mxu0  ;;  %v2714_v20 = vld [vmem:[#allocation8 + $0x8] sm:$0xff]   ;;  %v2720_v21 = vld [vmem:[#allocation8 + $0x10] sm:$0xff]  }
 0x846   :  { %v573_v24 = vpop.f32.mrb[18].mxu0  ;;  %v2725_v23 = vld [vmem:[#allocation8 + $0x18] sm:$0xff]  }
 0x847   :  { %2157 = vtanh.f32 %v576_v22  ;;  %v1817_v25 = vpop.f32.mrb[19].mxu0  ;;  %v2124_v22 = vld [vmem:[#allocation6 + $0x20] sm:$0xff]   ;;  %v2126_v24 = vld [vmem:[#allocation6 + $0x28] sm:$0xff]  }
 0x848   :  { %v2730_v25 = vld [vmem:[#allocation8 + $0x20] sm:$0xff]  }
 0x851   :  { %v2158_v26 = vpop.eup %2157 }
 0x852   :  { %v579_v27 = vpack.c.bf16 %v2158_v26, %v2158_v26  ;;  %v2128_v26 = vld [vmem:[#allocation6 + $0x30] sm:$0xff]  }
 0x854   :  { %1835 = vmatmul.mubr.bf16.vlgmr.msra.gmra.mrb[16].mxu1 %v579_v27  ;;  %v2734_v27 = vld [vmem:[#allocation8 + $0x28] sm:$0xff]  }
 0x855   :  { %1859 = vmatpush3.bf16.msra.mxu1 %v2379_v1  ;;  %1874 = vmatprep.mubr.msk.bf16.mxu1 %vm2285_vm0, %v2284_v0 }
 0x856   :  { %1860 = vmatprep.subr.bf16.mxu1 %v2284_v0 }
 0x859   :  { %1861 = vmatpush3.bf16.msra.mxu1 %v2385_v2 }
 0x85a   :  { %1862 = vmatprep.subr.bf16.mxu1 %v2284_v0 }
 0x85d   :  { %1863 = vmatpush3.bf16.msra.mxu1 %v2394_v3 }
 0x85e   :  { %1864 = vmatprep.subr.bf16.mxu1 %v2284_v0 }
 0x861   :  { %1865 = vmatpush3.bf16.msra.mxu1 %v2402_v4 }
 0x862   :  { %1866 = vmatprep.subr.bf16.mxu1 %v2284_v0 }
 0x865   :  { %1867 = vmatpush3.bf16.msra.mxu1 %v2411_v5 }
 0x866   :  { %1868 = vmatprep.subr.bf16.mxu1 %v2284_v0 }
 0x869   :  { %1869 = vmatpush3.bf16.msra.mxu1 %v2420_v6 }
 0x86a   :  { %1870 = vmatprep.subr.bf16.mxu1 %v2284_v0 }
 0x86d   :  { %1871 = vmatpush3.bf16.msra.mxu1 %v2429_v7 }
 0x86e   :  { %1872 = vmatprep.subr.bf16.mxu1 %v2284_v0 }
 0x871   :  { %1873 = vmatpush3.bf16.msra.mxu1 %v2439_v8 }
 0x872   :  { %1898 = vmatprep.subr.bf16.mxu1 %v2284_v0 }
 0x927   :  { %v614_v29 = vpop.f32.mrb[16].mxu1 }
 0x928   :  { %v620_v30 = vadd.f32 %v614_v29, %v578_v28  ;;  %v1836_v31 = vpop.f32.mrb[17].mxu1  ;;  %v2130_v28 = vld [vmem:[#allocation6 + $0x38] sm:$0xff]   ;;  %v2739_v29 = vld [vmem:[#allocation8 + $0x30] sm:$0xff]  }
 0x929   :  { %v617_v32 = vpop.f32.mrb[18].mxu1 }
 0x92a   :  { %2159 = vtanh.f32 %v620_v30  ;;  %v1837_v33 = vpop.f32.mrb[19].mxu1  ;;  %v2745_v30 = vld [vmem:[#allocation8 + $0x38] sm:$0xff]  }
 0x934   :  { %v2160_v34 = vpop.eup %2159 }
 0x935   :  { %v623_v35 = vpack.c.bf16 %v2160_v34, %v2160_v34 }
 0x937   :  { %1855 = vmatmul.mubr.bf16.vlgmr.msra.gmra.mrb[20].mxu0 %v623_v35 }
 0x938   :  { %1879 = vmatpush3.bf16.msra.mxu0 %v2379_v1  ;;  %1894 = vmatprep.mubr.msk.bf16.mxu0 %vm2285_vm0, %v2284_v0 }
 0x939   :  { %1880 = vmatprep.subr.bf16.mxu0 %v2284_v0 }
 0x93c   :  { %1881 = vmatpush3.bf16.msra.mxu0 %v2385_v2 }
 0x93d   :  { %1882 = vmatprep.subr.bf16.mxu0 %v2284_v0 }
 0x940   :  { %1883 = vmatpush3.bf16.msra.mxu0 %v2394_v3 }
 0x941   :  { %1884 = vmatprep.subr.bf16.mxu0 %v2284_v0 }
 0x944   :  { %1885 = vmatpush3.bf16.msra.mxu0 %v2402_v4 }
 0x945   :  { %1886 = vmatprep.subr.bf16.mxu0 %v2284_v0 }
 0x948   :  { %1887 = vmatpush3.bf16.msra.mxu0 %v2411_v5 }
 0x949   :  { %1888 = vmatprep.subr.bf16.mxu0 %v2284_v0 }
 0x94c   :  { %1889 = vmatpush3.bf16.msra.mxu0 %v2420_v6 }
 0x94d   :  { %1890 = vmatprep.subr.bf16.mxu0 %v2284_v0 }
 0x950   :  { %1891 = vmatpush3.bf16.msra.mxu0 %v2429_v7 }
 0x951   :  { %1892 = vmatprep.subr.bf16.mxu0 %v2284_v0 }
 0x954   :  { %1893 = vmatpush3.bf16.msra.mxu0 %v2439_v8 }
 0x955   :  { %1918 = vmatprep.subr.bf16.mxu0 %v2284_v0 }
 0xa0a   :  { %v658_v37 = vpop.f32.mrb[20].mxu0 }
 0xa0b   :  { %v664_v38 = vadd.f32 %v658_v37, %v622_v36  ;;  %v1856_v39 = vpop.f32.mrb[21].mxu0 }
 0xa0c   :  { %v661_v40 = vpop.f32.mrb[22].mxu0 }
 0xa0d   :  { %2161 = vtanh.f32 %v664_v38  ;;  %v1857_v41 = vpop.f32.mrb[23].mxu0 }
 0xa0e   :  { %v1405_v41 = vld [vmem:[%s2893_s4] ss:$0 sm:$0xff] }
 0xa17   :  { %v2162_v42 = vpop.eup %2161 }
 0xa18   :  { %v667_v43 = vpack.c.bf16 %v2162_v42, %v2162_v42 }
 0xa1a   :  { %1875 = vmatmul.mubr.bf16.vlgmr.msra.gmra.mrb[20].mxu1 %v667_v43 }
 0xa1b   :  { %1899 = vmatpush3.bf16.msra.mxu1 %v2379_v1  ;;  %1914 = vmatprep.mubr.msk.bf16.mxu1 %vm2285_vm0, %v2284_v0 }
 0xa1c   :  { %1900 = vmatprep.subr.bf16.mxu1 %v2284_v0 }
 0xa1f   :  { %1901 = vmatpush3.bf16.msra.mxu1 %v2385_v2 }
 0xa20   :  { %1902 = vmatprep.subr.bf16.mxu1 %v2284_v0 }
 0xa23   :  { %1903 = vmatpush3.bf16.msra.mxu1 %v2394_v3 }
 0xa24   :  { %1904 = vmatprep.subr.bf16.mxu1 %v2284_v0 }
 0xa27   :  { %1905 = vmatpush3.bf16.msra.mxu1 %v2402_v4 }
 0xa28   :  { %1906 = vmatprep.subr.bf16.mxu1 %v2284_v0 }
 0xa2b   :  { %1907 = vmatpush3.bf16.msra.mxu1 %v2411_v5 }
 0xa2c   :  { %1908 = vmatprep.subr.bf16.mxu1 %v2284_v0 }
 0xa2f   :  { %1909 = vmatpush3.bf16.msra.mxu1 %v2420_v6 }
 0xa30   :  { %1910 = vmatprep.subr.bf16.mxu1 %v2284_v0 }
 0xa33   :  { %1911 = vmatpush3.bf16.msra.mxu1 %v2429_v7 }
 0xa34   :  { %1912 = vmatprep.subr.bf16.mxu1 %v2284_v0 }
 0xa37   :  { %1913 = vmatpush3.bf16.msra.mxu1 %v2439_v8 }
 0xa38   :  { %1938 = vmatprep.subr.bf16.mxu1 %v2284_v0 }
 0xaed   :  { %v702_v45 = vpop.f32.mrb[20].mxu1 }
 0xaee   :  { %v708_v46 = vadd.f32 %v702_v45, %v666_v44  ;;  %v1876_v47 = vpop.f32.mrb[21].mxu1 }
 0xaef   :  { %v705_v48 = vpop.f32.mrb[22].mxu1 }
 0xaf0   :  { %2163 = vtanh.f32 %v708_v46  ;;  %v1877_v49 = vpop.f32.mrb[23].mxu1 }
 0xafa   :  { %v2164_v50 = vpop.eup %2163 }
 0xafb   :  { %v711_v51 = vpack.c.bf16 %v2164_v50, %v2164_v50 }
 0xafd   :  { %1895 = vmatmul.mubr.bf16.vlgmr.msra.gmra.mrb[24].mxu0 %v711_v51 }
 0xafe   :  { %1919 = vmatpush3.bf16.msra.mxu0 %v2379_v1  ;;  %1934 = vmatprep.mubr.msk.bf16.mxu0 %vm2285_vm0, %v2284_v0 }
 0xaff   :  { %1920 = vmatprep.subr.bf16.mxu0 %v2284_v0 }
 0xb02   :  { %1921 = vmatpush3.bf16.msra.mxu0 %v2385_v2 }
 0xb03   :  { %1922 = vmatprep.subr.bf16.mxu0 %v2284_v0 }
 0xb06   :  { %1923 = vmatpush3.bf16.msra.mxu0 %v2394_v3 }
 0xb07   :  { %1924 = vmatprep.subr.bf16.mxu0 %v2284_v0 }
 0xb0a   :  { %1925 = vmatpush3.bf16.msra.mxu0 %v2402_v4 }
 0xb0b   :  { %1926 = vmatprep.subr.bf16.mxu0 %v2284_v0 }
 0xb0e   :  { %1927 = vmatpush3.bf16.msra.mxu0 %v2411_v5 }
 0xb0f   :  { %1928 = vmatprep.subr.bf16.mxu0 %v2284_v0 }
 0xb12   :  { %1929 = vmatpush3.bf16.msra.mxu0 %v2420_v6 }
 0xb13   :  { %1930 = vmatprep.subr.bf16.mxu0 %v2284_v0 }
 0xb16   :  { %1931 = vmatpush3.bf16.msra.mxu0 %v2429_v7 }
 0xb17   :  { %1932 = vmatprep.subr.bf16.mxu0 %v2284_v0 }
 0xb1a   :  { %1933 = vmatpush3.bf16.msra.mxu0 %v2439_v8 }
 0xb1b   :  { %1958 = vmatprep.subr.bf16.mxu0 %v2284_v0 }
 0xbd0   :  { %v746_v53 = vpop.f32.mrb[24].mxu0 }
 0xbd1   :  { %v752_v54 = vadd.f32 %v746_v53, %v710_v52  ;;  %v1896_v55 = vpop.f32.mrb[25].mxu0 }
 0xbd2   :  { %v749_v56 = vpop.f32.mrb[26].mxu0 }
 0xbd3   :  { %2165 = vtanh.f32 %v752_v54  ;;  %v1897_v57 = vpop.f32.mrb[27].mxu0 }
 0xbdd   :  { %v2166_v58 = vpop.eup %2165 }
 0xbde   :  { %v755_v59 = vpack.c.bf16 %v2166_v58, %v2166_v58 }
 0xbe0   :  { %1915 = vmatmul.mubr.bf16.vlgmr.msra.gmra.mrb[24].mxu1 %v755_v59 }
 0xbe1   :  { %1939 = vmatpush3.bf16.msra.mxu1 %v2379_v1  ;;  %1954 = vmatprep.mubr.msk.bf16.mxu1 %vm2285_vm0, %v2284_v0  ;;  %v754_v1 = vld [vmem:[#allocation3 + $0x68] sm:$0xff] }
 0xbe2   :  { %1940 = vmatprep.subr.bf16.mxu1 %v2284_v0 }
 0xbe5   :  { %1941 = vmatpush3.bf16.msra.mxu1 %v2385_v2 }
 0xbe6   :  { %1942 = vmatprep.subr.bf16.mxu1 %v2284_v0 }
 0xbe9   :  { %1943 = vmatpush3.bf16.msra.mxu1 %v2394_v3 }
 0xbea   :  { %1944 = vmatprep.subr.bf16.mxu1 %v2284_v0 }
 0xbed   :  { %1945 = vmatpush3.bf16.msra.mxu1 %v2402_v4 }
 0xbee   :  { %1946 = vmatprep.subr.bf16.mxu1 %v2284_v0 }
 0xbf1   :  { %1947 = vmatpush3.bf16.msra.mxu1 %v2411_v5 }
 0xbf2   :  { %1948 = vmatprep.subr.bf16.mxu1 %v2284_v0 }
 0xbf5   :  { %1949 = vmatpush3.bf16.msra.mxu1 %v2420_v6  ;;  %v2117_v6 = vld [vmem:[#allocation6] sm:$0xff]  }
 0xbf6   :  { %1950 = vmatprep.subr.bf16.mxu1 %v2284_v0 }
 0xbf9   :  { %1951 = vmatpush3.bf16.msra.mxu1 %v2429_v7  ;;  %v2118_v7 = vld [vmem:[#allocation6 + $0x8] sm:$0xff]  }
 0xbfa   :  { %1952 = vmatprep.subr.bf16.mxu1 %v2284_v0 }
 0xbfd   :  { %1953 = vmatpush3.bf16.msra.mxu1 %v2439_v8  ;;  %v2120_v8 = vld [vmem:[#allocation6 + $0x10] sm:$0xff]  }
 0xbfe   :  { %1978 = vmatprep.subr.bf16.mxu1 %v2284_v0 }
 0xcb3   :  { %v790_v2 = vpop.f32.mrb[24].mxu1 }
 0xcb4   :  { %v796_v3 = vadd.f32 %v790_v2, %v754_v1  ;;  %v1916_v4 = vpop.f32.mrb[25].mxu1 }
 0xcb5   :  { %v793_v60 = vpop.f32.mrb[26].mxu1 }
 0xcb6   :  { %2167 = vtanh.f32 %v796_v3  ;;  %v1917_v5 = vpop.f32.mrb[27].mxu1 }
 0xcc0   :  { %v2168_v61 = vpop.eup %2167 }
 0xcc1   :  { %v799_v62 = vpack.c.bf16 %v2168_v61, %v2168_v61 }
 0xcc3   :  { %1935 = vmatmul.mubr.bf16.vlgmr.msra.gmra.mrb[28].mxu0 %v799_v62 }
 0xcc4   :  { %1974 = vmatprep.mubr.msk.bf16.mxu0 %vm2285_vm0, %v2284_v0  ;;  %1959 = vmatpush3.bf16.msra.mxu0 %v2117_v6 }
 0xcc5   :  { %1960 = vmatprep.subr.bf16.mxu0 %v2284_v0 }
 0xcc8   :  { %1961 = vmatpush3.bf16.msra.mxu0 %v2118_v7 }
 0xcc9   :  { %1962 = vmatprep.subr.bf16.mxu0 %v2284_v0 }
 0xccc   :  { %1963 = vmatpush3.bf16.msra.mxu0 %v2120_v8 }
 0xccd   :  { %1964 = vmatprep.subr.bf16.mxu0 %v2284_v0 }
 0xcd0   :  { %1965 = vmatpush3.bf16.msra.mxu0 %v2122_v63 }
 0xcd1   :  { %1966 = vmatprep.subr.bf16.mxu0 %v2284_v0 }
 0xcd4   :  { %1967 = vmatpush3.bf16.msra.mxu0 %v2124_v22  ;;  %v2133_v22 = vld [vmem:[%s2894_s5] sm:$0xff]  }
 0xcd5   :  { %1968 = vmatprep.subr.bf16.mxu0 %v2284_v0 }
 0xcd8   :  { %1969 = vmatpush3.bf16.msra.mxu0 %v2126_v24  ;;  %v2135_v24 = vld [vmem:[%s2894_s5 + $0x10] sm:$0xff]  }
 0xcd9   :  { %1970 = vmatprep.subr.bf16.mxu0 %v2284_v0 }
 0xcdc   :  { %1971 = vmatpush3.bf16.msra.mxu0 %v2128_v26 }
 0xcdd   :  { %1972 = vmatprep.subr.bf16.mxu0 %v2284_v0 }
 0xce0   :  { %1973 = vmatpush3.bf16.msra.mxu0 %v2130_v28 }
 0xce1   :  { %1998 = vmatprep.subr.bf16.mxu0 %v2284_v0 }
 0xd96   :  { %v834_v11 = vpop.f32.mrb[28].mxu0 }
 0xd97   :  { %v840_v12 = vadd.f32 %v834_v11, %v798_v10  ;;  %v1936_v13 = vpop.f32.mrb[29].mxu0 }
 0xd98   :  { %v837_v14 = vpop.f32.mrb[30].mxu0 }
 0xd99   :  { %2169 = vtanh.f32 %v840_v12  ;;  %v1937_v15 = vpop.f32.mrb[31].mxu0 }
 0xda3   :  { %v2170_v16 = vpop.eup %2169 }
 0xda4   :  { %v843_v19 = vpack.c.bf16 %v2170_v16, %v2170_v16 }
 0xda6   :  { %1955 = vmatmul.mubr.bf16.vlgmr.msra.gmra.mrb[28].mxu1 %v843_v19 }
 0xda7   :  { %1979 = vmatpush3.bf16.msra.mxu1 %v2711_v17  ;;  %1994 = vmatprep.mubr.msk.bf16.mxu1 %vm2285_vm0, %v2284_v0 }
 0xda8   :  { %1980 = vmatprep.subr.bf16.mxu1 %v2284_v0 }
 0xdab   :  { %1981 = vmatpush3.bf16.msra.mxu1 %v2714_v20 }
 0xdac   :  { %1982 = vmatprep.subr.bf16.mxu1 %v2284_v0 }
 0xdaf   :  { %1983 = vmatpush3.bf16.msra.mxu1 %v2720_v21 }
 0xdb0   :  { %1984 = vmatprep.subr.bf16.mxu1 %v2284_v0 }
 0xdb3   :  { %1985 = vmatpush3.bf16.msra.mxu1 %v2725_v23 }
 0xdb4   :  { %1986 = vmatprep.subr.bf16.mxu1 %v2284_v0 }
 0xdb7   :  { %1987 = vmatpush3.bf16.msra.mxu1 %v2730_v25 }
 0xdb8   :  { %1988 = vmatprep.subr.bf16.mxu1 %v2284_v0 }
 0xdbb   :  { %1989 = vmatpush3.bf16.msra.mxu1 %v2734_v27 }
 0xdbc   :  { %1990 = vmatprep.subr.bf16.mxu1 %v2284_v0 }
 0xdbf   :  { %1991 = vmatpush3.bf16.msra.mxu1 %v2739_v29 }
 0xdc0   :  { %1992 = vmatprep.subr.bf16.mxu1 %v2284_v0 }
 0xdc3   :  { %1993 = vmatpush3.bf16.msra.mxu1 %v2745_v30 }
 0xdc4   :  { %2018 = vmatprep.subr.bf16.mxu1 %v2284_v0 }
 0xdc6   :  { %1995 = vmatmul.mubr.bf16.vlgmr.msra.gmra.mrb[32].mxu1 %v2286_v9  ;;  %v842_v9 = vld [vmem:[#allocation3 + $0x78] sm:$0xff] }
 0xdc7   :  { %2019 = vmatpush3.bf16.msra.mxu1 %v2711_v17  ;;  %2034 = vmatprep.mubr.msk.bf16.mxu1 %vm2285_vm0, %v2284_v0 }
 0xdc8   :  { %2020 = vmatprep.subr.bf16.mxu1 %v2284_v0 }
 0xdcb   :  { %2021 = vmatpush3.bf16.msra.mxu1 %v2714_v20 }
 0xdcc   :  { %2022 = vmatprep.subr.bf16.mxu1 %v2284_v0 }
 0xdcf   :  { %2023 = vmatpush3.bf16.msra.mxu1 %v2720_v21 }
 0xdd0   :  { %2024 = vmatprep.subr.bf16.mxu1 %v2284_v0 }
 0xdd3   :  { %2025 = vmatpush3.bf16.msra.mxu1 %v2725_v23 }
 0xdd4   :  { %2026 = vmatprep.subr.bf16.mxu1 %v2284_v0 }
 0xdd7   :  { %2027 = vmatpush3.bf16.msra.mxu1 %v2730_v25 }
 0xdd8   :  { %2028 = vmatprep.subr.bf16.mxu1 %v2284_v0 }
 0xddb   :  { %2029 = vmatpush3.bf16.msra.mxu1 %v2734_v27 }
 0xddc   :  { %2030 = vmatprep.subr.bf16.mxu1 %v2284_v0 }
 0xddf   :  { %2031 = vmatpush3.bf16.msra.mxu1 %v2739_v29 }
 0xde0   :  { %2032 = vmatprep.subr.bf16.mxu1 %v2284_v0 }
 0xde3   :  { %2033 = vmatpush3.bf16.msra.mxu1 %v2745_v30 }
 0xde4   :  { %2058 = vmatprep.subr.bf16.mxu1 %v2284_v0 }
 0xe79   :  { %v878_v31 = vpop.f32.mrb[28].mxu1 }
 0xe7a   :  { %v884_v32 = vadd.f32 %v878_v31, %v842_v9  ;;  %v1956_v33 = vpop.f32.mrb[29].mxu1 }
 0xe7b   :  { %v881_v34 = vpop.f32.mrb[30].mxu1  ;;  %v2138_v33 = vld [vmem:[%s2894_s5 + $0x28] sm:$0xff]  }
 0xe7c   :  { %2171 = vtanh.f32 %v884_v32  ;;  %v1957_v35 = vpop.f32.mrb[31].mxu1  ;;  %v2137_v32 = vld [vmem:[%s2894_s5 + $0x20] sm:$0xff]   ;;  %v2139_v34 = vld [vmem:[%s2894_s5 + $0x30] sm:$0xff]  }
 0xe7d   :  { %v2140_v35 = vld [vmem:[%s2894_s5 + $0x38] sm:$0xff]  }
 0xe86   :  { %v2172_v36 = vpop.eup %2171 }
 0xe87   :  { %v886_v37 = vpack.c.bf16 %v2172_v36, %v2593_v18 }
 0xe89   :  { %1975 = vmatmul.mubr.bf16.vlgmr.msra.gmra.mrb[32].mxu0 %v886_v37 }
 0xe8a   :  { %1999 = vmatpush3.bf16.msra.mxu0 %v2711_v17  ;;  %2014 = vmatprep.mubr.msk.bf16.mxu0 %vm2285_vm0, %v2284_v0 }
 0xe8b   :  { %2000 = vmatprep.subr.bf16.mxu0 %v2284_v0 }
 0xe8e   :  { %2001 = vmatpush3.bf16.msra.mxu0 %v2714_v20 }
 0xe8f   :  { %2002 = vmatprep.subr.bf16.mxu0 %v2284_v0 }
 0xe92   :  { %2003 = vmatpush3.bf16.msra.mxu0 %v2720_v21 }
 0xe93   :  { %2004 = vmatprep.subr.bf16.mxu0 %v2284_v0 }
 0xe96   :  { %2005 = vmatpush3.bf16.msra.mxu0 %v2725_v23 }
 0xe97   :  { %2006 = vmatprep.subr.bf16.mxu0 %v2284_v0 }
 0xe99   :  { %v1100_v18 = vpop.f32.mrb[32].mxu1 }
 0xe9a   :  { %2007 = vmatpush3.bf16.msra.mxu0 %v2730_v25  ;;  %v1996_v38 = vpop.f32.mrb[33].mxu1 }
 0xe9b   :  { %2008 = vmatprep.subr.bf16.mxu0 %v2284_v0  ;;  %v1103_v39 = vpop.f32.mrb[34].mxu1 }
 0xe9c   :  { %v1997_v40 = vpop.f32.mrb[35].mxu1 }
 0xe9e   :  { %2009 = vmatpush3.bf16.msra.mxu0 %v2734_v27 }
 0xe9f   :  { %2010 = vmatprep.subr.bf16.mxu0 %v2284_v0 }
 0xea2   :  { %2011 = vmatpush3.bf16.msra.mxu0 %v2739_v29 }
 0xea3   :  { %2012 = vmatprep.subr.bf16.mxu0 %v2284_v0 }
 0xea6   :  { %2013 = vmatpush3.bf16.msra.mxu0 %v2745_v30 }
 0xea7   :  { %2038 = vmatprep.subr.bf16.mxu0 %v2284_v0 }
 0xf5c   :  { %v975_v42 = vpop.f32.mrb[32].mxu0 }
 0xf5d   :  { %v976_v43 = vadd.f32 %v1405_v41, %v975_v42  ;;  %v1976_v44 = vpop.f32.mrb[33].mxu0  ;;  %v1422_v42 = vld [vmem:[%s2895_s6] ss:$0 sm:$0xff] }
 0xf5e   :  { %v978_v45 = vpop.f32.mrb[34].mxu0 }
 0xf5f   :  { %v979_v46 = vadd.f32 %v1405_v41, %v978_v45  ;;  %v1977_v47 = vpop.f32.mrb[35].mxu0  ;;  %v990_v48 = vrot.slane %v976_v43, 1  ;;  %v994_v49 = vrot.slane %v976_v43, 2  ;;  %v1000_v50 = vrot.slane %v976_v43, 3 }
 0xf60   :  { %v1006_v56 = vrot.slane %v976_v43, 4 }
 0xf61   :  { %v983_v51 = vrot.slane %v979_v46, 7  ;;  %v992_v52 = vsel %vm985_vm1, %v990_v48, %v979_v46  ;;  %v996_v53 = vrot.slane %v979_v46, 1  ;;  %v1002_v54 = vrot.slane %v979_v46, 2 }
 0xf62   :  { %v993_v55 = vsel %vm987_vm2, %v992_v52, 0.0  ;;  %v1008_v57 = vrot.slane %v979_v46, 3 }
 0xf63   :  { %v986_v58 = vsel %vm985_vm1, %v976_v43, %v983_v51  ;;  %v998_v59 = vsel %vm985_vm1, %v994_v49, %v996_v53  ;;  %v1004_v1 = vsel %vm985_vm1, %v1000_v50, %v1002_v54 }
 0xf64   :  { %v988_v2 = vsel %vm987_vm2, %v986_v58, 0.0  ;;  %v999_v3 = vsel %vm987_vm2, %v998_v59, 0.0  ;;  %v2798_v4 = vsel %vm987_vm2, %v1004_v1, 0.0  ;;  %v1010_v60 = vsel %vm985_vm1, %v1006_v56, %v1008_v57 }
 0xf65   :  { %v1106_v5 = vadd.f32 %v1100_v18, %v988_v2  ;;  %v2802_v61 = vsel %vm987_vm2, %v1010_v60, 0.0 }
 0xf67   :  { %2173 = vtanh.f32 %v1106_v5 }
 0xf71   :  { %v2174_v62 = vpop.eup %2173 }
 0xf72   :  { %v1109_v6 = vpack.c.bf16 %v2174_v62, %v2174_v62 }
 0xf74   :  { %2015 = vmatmul.mubr.bf16.vlgmr.msra.gmra.mrb[36].mxu0 %v1109_v6 }
 0xf75   :  { %2039 = vmatpush3.bf16.msra.mxu0 %v2711_v17  ;;  %2054 = vmatprep.mubr.msk.bf16.mxu0 %vm2285_vm0, %v2284_v0 }
 0xf76   :  { %2040 = vmatprep.subr.bf16.mxu0 %v2284_v0 }
 0xf79   :  { %2041 = vmatpush3.bf16.msra.mxu0 %v2714_v20 }
 0xf7a   :  { %2042 = vmatprep.subr.bf16.mxu0 %v2284_v0 }
 0xf7d   :  { %2043 = vmatpush3.bf16.msra.mxu0 %v2720_v21 }
 0xf7e   :  { %2044 = vmatprep.subr.bf16.mxu0 %v2284_v0 }
 0xf81   :  { %2045 = vmatpush3.bf16.msra.mxu0 %v2725_v23 }
 0xf82   :  { %2046 = vmatprep.subr.bf16.mxu0 %v2284_v0 }
 0xf85   :  { %2047 = vmatpush3.bf16.msra.mxu0 %v2730_v25 }
 0xf86   :  { %2048 = vmatprep.subr.bf16.mxu0 %v2284_v0 }
 0xf89   :  { %2049 = vmatpush3.bf16.msra.mxu0 %v2734_v27 }
 0xf8a   :  { %2050 = vmatprep.subr.bf16.mxu0 %v2284_v0 }
 0xf8d   :  { %2051 = vmatpush3.bf16.msra.mxu0 %v2739_v29 }
 0xf8e   :  { %2052 = vmatprep.subr.bf16.mxu0 %v2284_v0 }
 0xf91   :  { %2053 = vmatpush3.bf16.msra.mxu0 %v2745_v30 }
 0xf92   :  { %2078 = vmatprep.subr.bf16.mxu0 %v2284_v0 }
0x1047   :  { %v1144_v7 = vpop.f32.mrb[36].mxu0 }
0x1048   :  { %v1150_v8 = vadd.f32 %v1144_v7, %v993_v55  ;;  %v2016_v63 = vpop.f32.mrb[37].mxu0 }
0x1049   :  { %v1147_v10 = vpop.f32.mrb[38].mxu0 }
0x104a   :  { %2175 = vtanh.f32 %v1150_v8  ;;  %v2017_v11 = vpop.f32.mrb[39].mxu0 }
0x1054   :  { %v2176_v12 = vpop.eup %2175 }
0x1055   :  { %v1153_v13 = vpack.c.bf16 %v2176_v12, %v2176_v12 }
0x1057   :  { %2035 = vmatmul.mubr.bf16.vlgmr.msra.gmra.mrb[36].mxu1 %v1153_v13 }
0x1058   :  { %2059 = vmatpush3.bf16.msra.mxu1 %v2711_v17  ;;  %2074 = vmatprep.mubr.msk.bf16.mxu1 %vm2285_vm0, %v2284_v0 }
0x1059   :  { %2060 = vmatprep.subr.bf16.mxu1 %v2284_v0 }
0x105c   :  { %2061 = vmatpush3.bf16.msra.mxu1 %v2714_v20 }
0x105d   :  { %2062 = vmatprep.subr.bf16.mxu1 %v2284_v0 }
0x1060   :  { %2063 = vmatpush3.bf16.msra.mxu1 %v2720_v21 }
0x1061   :  { %2064 = vmatprep.subr.bf16.mxu1 %v2284_v0 }
0x1064   :  { %2065 = vmatpush3.bf16.msra.mxu1 %v2725_v23  ;;  %v2134_v23 = vld [vmem:[%s2894_s5 + $0x8] sm:$0xff]  }
0x1065   :  { %2066 = vmatprep.subr.bf16.mxu1 %v2284_v0 }
0x1068   :  { %2067 = vmatpush3.bf16.msra.mxu1 %v2730_v25  ;;  %v2136_v25 = vld [vmem:[%s2894_s5 + $0x18] sm:$0xff]   ;;  %s2249_s5 = scalar_lea.vmem %s1388_s24, 32 }
0x1069   :  { %2068 = vmatprep.subr.bf16.mxu1 %v2284_v0  ;;  %p2250_p10 = scmp.ne.s32.totalorder %s1388_s24, %s2249_s5  ;;  %p2255_p12 = scmp.lt.s32.totalorder %s2249_s5, %s2249_s5 }
0x106b   :  { %p2256_p13 = por %p2255_p12, %p2254_p11 }
0x106c   :  { %2069 = vmatpush3.bf16.msra.mxu1 %v2734_v27 }
0x106d   :  { %2070 = vmatprep.subr.bf16.mxu1 %v2284_v0  ;;  %p2257_p0 = pnand %p2256_p13, %p2250_p10 }
0x1070   :  { %2071 = vmatpush3.bf16.msra.mxu1 %v2739_v29 }
0x1071   :  { %2072 = vmatprep.subr.bf16.mxu1 %v2284_v0 }
0x1074   :  { %2073 = vmatpush3.bf16.msra.mxu1 %v2745_v30 }
0x112a   :  { %v1188_v14 = vpop.f32.mrb[36].mxu1 }
0x112b   :  { %v1194_v15 = vadd.f32 %v1188_v14, %v999_v3  ;;  %v2036_v16 = vpop.f32.mrb[37].mxu1 }
0x112c   :  { %v1191_v17 = vpop.f32.mrb[38].mxu1 }
0x112d   :  { %2177 = vtanh.f32 %v1194_v15  ;;  %v2037_v19 = vpop.f32.mrb[39].mxu1 }
0x1137   :  { %v2178_v20 = vpop.eup %2177 }
0x1138   :  { %v1197_v21 = vpack.c.bf16 %v2178_v20, %v2178_v20 }
0x113a   :  { %2055 = vmatmul.mubr.bf16.vlgmr.msra.gmra.mrb[40].mxu0 %v1197_v21 }
0x113b   :  { %2094 = vmatprep.mubr.msk.bf16.mxu0 %vm2285_vm0, %v2284_v0  ;;  %2079 = vmatpush3.bf16.msra.mxu0 %v2133_v22 }
0x113c   :  { %2080 = vmatprep.subr.bf16.mxu0 %v2284_v0 }
0x113f   :  { %2081 = vmatpush3.bf16.msra.mxu0 %v2134_v23 }
0x1140   :  { %2082 = vmatprep.subr.bf16.mxu0 %v2284_v0 }
0x1143   :  { %2083 = vmatpush3.bf16.msra.mxu0 %v2135_v24 }
0x1144   :  { %2084 = vmatprep.subr.bf16.mxu0 %v2284_v0 }
0x1147   :  { %2085 = vmatpush3.bf16.msra.mxu0 %v2136_v25 }
0x1148   :  { %2086 = vmatprep.subr.bf16.mxu0 %v2284_v0 }
0x114b   :  { %2087 = vmatpush3.bf16.msra.mxu0 %v2137_v32 }
0x114c   :  { %2088 = vmatprep.subr.bf16.mxu0 %v2284_v0 }
0x114f   :  { %2089 = vmatpush3.bf16.msra.mxu0 %v2138_v33 }
0x1150   :  { %2090 = vmatprep.subr.bf16.mxu0 %v2284_v0 }
0x1153   :  { %2091 = vmatpush3.bf16.msra.mxu0 %v2139_v34 }
0x1154   :  { %2092 = vmatprep.subr.bf16.mxu0 %v2284_v0 }
0x1157   :  { %2093 = vmatpush3.bf16.msra.mxu0 %v2140_v35 }
0x120d   :  { %v1232_v26 = vpop.f32.mrb[40].mxu0 }
0x120e   :  { %v1238_v27 = vadd.f32 %v1232_v26, %v2798_v4  ;;  %v2056_v28 = vpop.f32.mrb[41].mxu0 }
0x120f   :  { %v1235_v29 = vpop.f32.mrb[42].mxu0 }
0x1210   :  { %2179 = vtanh.f32 %v1238_v27  ;;  %v2057_v30 = vpop.f32.mrb[43].mxu0 }
0x121a   :  { %v2180_v9 = vpop.eup %2179 }
0x121b   :  { %v1241_v31 = vpack.c.bf16 %v2180_v9, %v2180_v9 }
0x121d   :  { %2075 = vmatmul.mubr.bf16.vlgmr.msra.gmra.mrb[40].mxu1 %v1241_v31 }
0x12f0   :  { %v1276_v36 = vpop.f32.mrb[40].mxu1 }
0x12f1   :  { %v1282_v37 = vadd.f32 %v1276_v36, %v2802_v61  ;;  %v2076_v18 = vpop.f32.mrb[41].mxu1 }
0x12f2   :  { %v1279_v38 = vpop.f32.mrb[42].mxu1 }
0x12f3   :  { %2181 = vtanh.f32 %v1282_v37  ;;  %v2077_v39 = vpop.f32.mrb[43].mxu1 }
0x12fd   :  { %v2182_v40 = vpop.eup %2181 }
0x12fe   :  { %v1284_v41 = vpack.c.bf16 %v2182_v40, %v2182_v40 }
0x1300   :  { %2095 = vmatmul.mubr.bf16.vlgmr.msra.gmra.mrb[44].mxu0 %v1284_v41 }
0x13d3   :  { %v1373_v0 = vpop.f32.mrb[44].mxu0 }
0x13d4   :  { %v1374_v43 = vadd.f32 %v1422_v42, %v1373_v0  ;;  %v2096_v44 = vpop.f32.mrb[45].mxu0 }
0x13d5   :  { %v1376_v45 = vpop.f32.mrb[46].mxu0 }
0x13d6   :  { %v2097_v46 = vpop.f32.mrb[47].mxu0  ;;  %1380 = vst.msk [vmem:[#allocation9] sm:$0x3] %vm1379_vm3, %v1374_v43 }
0x13d7   :  { %2260 = shalt.err (!%p2257_p0)
}
0x13d8   :  { %s2261_s6 = scalar_lea.hbm %s2896_s7, 32 }
0x13d9   :  { %p2262_p1 = scmp.ne.s32.totalorder %s2896_s7, %s2261_s6  ;;  %p2265_p2 = scmp.lt.u32.totalorder %s2261_s6, %s2896_s7 }
0x13db   :  { %p2267_p3 = pnand %p2265_p2, %p2262_p1 }
0x13dd   :  { %2270 = shalt.err (!%p2267_p3)
}
0x13de   :  { %1390 = dma.vmem_to_hbm [thread:$0]  %s1388_s24, 32, %s2896_s7, [#allocation5]  }
0x13df   :  { %2275 = dma.done.wait [#allocation5], 32  }
0x13e0   :  { %2276 = vsyncadd [#allocation5], 4294967264 }
0x13e1   :  { %1394 = vsyncpa [#allocation4], 1 }
0x13e2   :  { %1395 = vsyncpa [#allocation7], 1 }
0x13e3   :  { %1396 = vsyncpa [#allocation5], 1 }

</bundles_post_ra>
